<compile_context>
chip_gen: v6e
topology: v6e:2x2x1
jax: 0.10.0
libtpu: 0.0.40
codegen_flags: <defaults>
</compile_context>

<pallas_src>
import functools

import jax
import jax.numpy as jnp
from jax import lax
from jax.experimental import pallas as pl
from jax.experimental.pallas import tpu as pltpu


def _round_up(x, m):
    return (x + m - 1) // m * m


def _vmem_limit_bytes():
    """Chip VMEM minus compiler headroom: ~48 MiB on v7x, ~112 MiB on v5e/v6e."""
    phys = 64 << 20  # conservative fallback = v7x per-TC VMEM
    try:
        info = pltpu.get_tpu_info()
        phys = int(getattr(info, "vmem_capacity_bytes", phys)) or phys
    except Exception:
        pass
    return max(32 << 20, phys - (16 << 20))


def _pick_batch_tile(B, T, E, H, vmem_limit):
    """Batch tile: multiple of 16 (bf16 sublane packing), <=256, sized so the real per-tile
    VMEM (2x-buffered bf16 emb block + bf16 x-proj scratch + 2x-buffered weights + 2x-buffered
    f32 output + f32 projection temporary) fits under vmem_limit."""
    weights = 2 * (E * 8 * H * 2 + 2 * H * 4 * H * 2 + 8 * H * 4)  # 2x-buffered bf16 W_ih|W_hh + f32 bias
    headroom = 6 << 20                                             # proj f32 temp (<=2 MiB) + live vregs
    budget = max(1 << 20, vmem_limit - weights - headroom)
    per_row = (2 * T * E * 2        # emb block, double-buffered, bf16
               + T * 8 * H * 2      # fused x-projection scratch, bf16
               + 2 * 2 * H * 4)     # output block, double-buffered, f32
    cap = max(16, budget // per_row // 16 * 16)
    b_tile = int(min(256, cap, _round_up(B, 16)))
    # Keep >=2 batch tiles when the batch is big enough so both v7x TensorCores get work.
    if B >= 32:
        b_tile = int(min(b_tile, _round_up((B + 1) // 2, 16)))
    return b_tile


def _pick_t_chunk(T, b_tile, H, temp_budget=2 << 20):
    """Largest divisor of T whose f32 projection temporary (t_chunk*b_tile*8H*4B) stays under budget."""
    max_tc = max(1, temp_budget // (b_tile * 8 * H * 4))
    tc = min(T, max_tc)
    while T % tc:
        tc -= 1
    return tc


def bilstm_kernel(emb_ref, wih_ref, b_ref, whh_f_ref, whh_b_ref,
                  out_ref, x_ref, *, t_chunk):
    T, Bt, E = emb_ref.shape
    H = whh_f_ref.shape[0]
    G = 4 * H

    wih = wih_ref[...]        # (E, 8H) bf16, VMEM-resident across all grid steps
    bias = b_ref[...]         # (1, 8H) f32
    whh_f = whh_f_ref[...]    # (H, 4H) bf16
    whh_b = whh_b_ref[...]    # (H, 4H) bf16

    # --- Fused input projection: one bf16 (rows, E) @ (E, 8H) matmul for BOTH directions, chunked
    # over T so the transient f32 result stays small; stored bf16 in a single scratch. ---
    def project(start, nt):
        e2d = emb_ref[pl.ds(start, nt)].reshape(nt * Bt, E)                       # bf16
        p = jnp.dot(e2d, wih, preferred_element_type=jnp.float32) + bias          # f32 accum
        x_ref[pl.ds(start, nt)] = p.reshape(nt, Bt, 2 * G).astype(x_ref.dtype)    # bf16 store

    n_chunks = T // t_chunk
    if n_chunks == 1:
        project(0, T)
    else:
        @pl.loop(0, n_chunks)
        def _(ci):
            project(pl.multiple_of(ci * t_chunk, t_chunk), t_chunk)

    def gates_to_hc(gates, c):
        # f32 nonlinearities (keep numerics tight; v5e has no bf16 EUP/VPU path).
        i = jax.nn.sigmoid(gates[:, 0 * H:1 * H])
        f = jax.nn.sigmoid(gates[:, 1 * H:2 * H])
        g = jnp.tanh(gates[:, 2 * H:3 * H])
        o = jax.nn.sigmoid(gates[:, 3 * H:4 * H])
        c_new = f * c + i * g
        h_new = o * jnp.tanh(c_new)
        return h_new, c_new

    # --- Interleaved fwd/bwd recurrence: one loop, two independent carries; bf16 MXU, f32 state. ---
    def step(t, carry):
        h_f, c_f, h_b, c_b = carry
        rt = T - 1 - t
        g_f = x_ref[t, :, :G] + jnp.dot(h_f.astype(jnp.bfloat16), whh_f,
                                        preferred_element_type=jnp.float32)
        g_b = x_ref[rt, :, G:] + jnp.dot(h_b.astype(jnp.bfloat16), whh_b,
                                         preferred_element_type=jnp.float32)
        h_f, c_f = gates_to_hc(g_f, c_f)
        h_b, c_b = gates_to_hc(g_b, c_b)
        return (h_f, c_f, h_b, c_b)

    zeros = jnp.zeros((Bt, H), jnp.float32)
    unroll = True if T <= 32 else 8   # cross-step visibility / independent MXU pushes for the LLO scheduler
    h_f, _, h_b, _ = lax.fori_loop(0, T, step, (zeros, zeros, zeros, zeros),
                                   unroll=unroll)

    # Lane-dense output slab: concat(h_n[fwd], h_n[bwd]).  FC + dropout(eval)=identity handled in XLA.
    out_ref[:, :H] = h_f
    out_ref[:, H:] = h_b


def bilstm_forward(x_tokens, params):
    emb_table = params["embedding"]                  # (V, E), row 0 = zeros (padding_idx=0)
    B, T = x_tokens.shape
    E = emb_table.shape[1]
    H = params["whh_f"].shape[0]

    # Fuse the per-direction input projections and cast MXU operands to bf16.
    wih = jnp.concatenate([params["wih_f"], params["wih_b"]], axis=1).astype(jnp.bfloat16)  # (E, 8H)
    bias = jnp.concatenate([params["b_f"], params["b_b"]], axis=1)                          # (1, 8H) f32
    whh_f = params["whh_f"].astype(jnp.bfloat16)
    whh_b = params["whh_b"].astype(jnp.bfloat16)

    vmem_limit = _vmem_limit_bytes()
    b_tile = _pick_batch_tile(B, T, E, H, vmem_limit)
    B_pad = _round_up(B, b_tile)
    if B_pad != B:
        x_tokens = jnp.pad(x_tokens, ((0, B_pad - B), (0, 0)))   # padded rows use token 0 (padding_idx)

    # Gather directly time-major, in bf16 (no post-gather transpose pass, half the DMA bytes).
    emb_tm = jnp.take(emb_table.astype(jnp.bfloat16), x_tokens.T, axis=0)   # (T, B_pad, E)

    t_chunk = _pick_t_chunk(T, b_tile, H)

    def rep(arr):   # whole-array weight, resident across all grid steps
        return pl.BlockSpec(arr.shape, lambda i, n=arr.ndim: (0,) * n)

    grid = (B_pad // b_tile,)
    kernel = functools.partial(bilstm_kernel, t_chunk=t_chunk)
    h_cat = pl.pallas_call(
        kernel,
        out_shape=jax.ShapeDtypeStruct((B_pad, 2 * H), jnp.float32),
        grid=grid,
        in_specs=[
            pl.BlockSpec((T, b_tile, E), lambda i: (0, i, 0)),   # batch-tiled embeddings (pipelined DMA)
            rep(wih), rep(bias), rep(whh_f), rep(whh_b),
        ],
        out_specs=pl.BlockSpec((b_tile, 2 * H), lambda i: (i, 0)),
        scratch_shapes=[pltpu.VMEM((T, b_tile, 8 * H), jnp.bfloat16)],   # ONE fused x-proj scratch
        compiler_params=pltpu.CompilerParams(
            dimension_semantics=("parallel",),        # batch tiles independent -> megacore on v7x
            vmem_limit_bytes=int(vmem_limit)),
    )(emb_tm, wih, bias, whh_f, whh_b)

    # Dropout(eval) == identity.  Final FC in plain JAX (N=1 matmul would waste MXU lanes in-kernel).
    out = h_cat[:B] @ params["fc_w"] + params["fc_b"]
    return out[:, 0]                                   # (B,)  == out.squeeze(1)


def init_params(key, vocab_size, embedding_dim, hidden_dim):
    V, E, H = vocab_size, embedding_dim, hidden_dim
    ks = jax.random.split(key, 12)
    k = 1.0 / jnp.sqrt(jnp.float32(H))

    def unif(kk, shape):
        return jax.random.uniform(kk, shape, jnp.float32, -k, k)

    emb = jax.random.normal(ks[0], (V, E), jnp.float32)
    emb = emb.at[0].set(0.0)                          # padding_idx=0

    return {
        "embedding": emb,
        # forward direction
        "wih_f": unif(ks[1], (E, 4 * H)),
        "whh_f": unif(ks[2], (H, 4 * H)),
        "b_f":   unif(ks[3], (1, 4 * H)) + unif(ks[4], (1, 4 * H)),   # bias_ih + bias_hh
        # backward direction
        "wih_b": unif(ks[5], (E, 4 * H)),
        "whh_b": unif(ks[6], (H, 4 * H)),
        "b_b":   unif(ks[7], (1, 4 * H)) + unif(ks[8], (1, 4 * H)),
        # fc
        "fc_w":  unif(ks[9], (2 * H, 1)),
        "fc_b":  unif(ks[10], (1, 1)),
    }


def bilstm_forward_ref(x_tokens, params):
    """Pure-JAX f32 reference with identical math for correctness check."""
    emb = jnp.take(params["embedding"], x_tokens, axis=0)        # (B, T, E)
    B, T, E = emb.shape
    H = params["whh_f"].shape[0]

    def run_dir(wih, whh, b, reverse):
        xproj = jnp.einsum("bte,eg->btg", emb, wih) + b           # (B, T, 4H)
        if reverse:
            xproj = xproj[:, ::-1, :]

        def step(carry, xt):
            h, c = carry
            gates = xt + h @ whh
            i = jax.nn.sigmoid(gates[:, 0 * H:1 * H])
            f = jax.nn.sigmoid(gates[:, 1 * H:2 * H])
            g = jnp.tanh(gates[:, 2 * H:3 * H])
            o = jax.nn.sigmoid(gates[:, 3 * H:4 * H])
            c = f * c + i * g
            h = o * jnp.tanh(c)
            return (h, c), None

        h0 = jnp.zeros((B, H), jnp.float32)
        c0 = jnp.zeros((B, H), jnp.float32)
        (h_last, _), _ = lax.scan(step, (h0, c0), jnp.transpose(xproj, (1, 0, 2)))
        return h_last

    h_f = run_dir(params["wih_f"], params["whh_f"], params["b_f"], False)
    h_b = run_dir(params["wih_b"], params["whh_b"], params["b_b"], True)
    h_cat = jnp.concatenate([h_f, h_b], axis=1)
    return (h_cat @ params["fc_w"] + params["fc_b"])[:, 0]


if __name__ == "__main__":
    vocab_size, embedding_dim, hidden_dim = 50, 16, 32
    B, T = 2, 8

    key = jax.random.PRNGKey(0)
    k_tok, k_par = jax.random.split(key)
    params = init_params(k_par, vocab_size, embedding_dim, hidden_dim)
    x = jax.random.randint(k_tok, (B, T), 0, vocab_size, dtype=jnp.int32)

    fwd = jax.jit(bilstm_forward)
    out = jax.block_until_ready(fwd(x, params))
    ref = jax.block_until_ready(bilstm_forward_ref(x, params))

    assert out.shape == (B,)
    # bf16 MXU path vs f32 reference -> slightly looser tolerances (expected, per review).
    assert jnp.allclose(out, ref, atol=3e-2, rtol=3e-2), (out, ref)
    print("KERNEL_OK")
</pallas_src>

<mosaic_0001>
module attributes {stable_mosaic.version = 11 : i64} {
  func.func @bilstm_kernel(%arg0: i32, %arg1: memref<8x16x16xbf16, #tpu.memory_space<vmem>>, %arg2: memref<16x256xbf16, #tpu.memory_space<vmem>>, %arg3: memref<1x256xf32, #tpu.memory_space<vmem>>, %arg4: memref<32x128xbf16, #tpu.memory_space<vmem>>, %arg5: memref<32x128xbf16, #tpu.memory_space<vmem>>, %arg6: memref<16x64xf32, #tpu.memory_space<vmem>>, %arg7: memref<8x16x256xbf16, #tpu.memory_space<vmem>>) attributes {dimension_semantics = [#tpu.dimension_semantics<parallel>], iteration_bounds = array<i64: 1>, scalar_prefetch = 0 : i64, scratch_operands = 1 : i64, tpu.core_type = #tpu.core_type<tc>, window_params = [{transform_indices = @transform_0, window_bounds = array<i64: 8, 16, 16>}, {pipeline_mode = #tpu.pipeline_mode<synchronous>, transform_indices = @transform_1, window_bounds = array<i64: 16, 256>}, {pipeline_mode = #tpu.pipeline_mode<synchronous>, transform_indices = @transform_2, window_bounds = array<i64: 1, 256>}, {pipeline_mode = #tpu.pipeline_mode<synchronous>, transform_indices = @transform_3, window_bounds = array<i64: 32, 128>}, {pipeline_mode = #tpu.pipeline_mode<synchronous>, transform_indices = @transform_4, window_bounds = array<i64: 32, 128>}, {transform_indices = @transform_5, window_bounds = array<i64: 16, 64>}]} {
    %c0 = arith.constant 0 : index
    %c0_0 = arith.constant 0 : index
    %0 = vector.load %arg2[%c0, %c0_0] : memref<16x256xbf16, #tpu.memory_space<vmem>>, vector<16x256xbf16>
    %c0_1 = arith.constant 0 : index
    %c0_2 = arith.constant 0 : index
    %1 = vector.load %arg3[%c0_1, %c0_2] : memref<1x256xf32, #tpu.memory_space<vmem>>, vector<1x256xf32>
    %c0_3 = arith.constant 0 : index
    %c0_4 = arith.constant 0 : index
    %2 = vector.load %arg4[%c0_3, %c0_4] : memref<32x128xbf16, #tpu.memory_space<vmem>>, vector<32x128xbf16>
    %c0_5 = arith.constant 0 : index
    %c0_6 = arith.constant 0 : index
    %3 = vector.load %arg5[%c0_5, %c0_6] : memref<32x128xbf16, #tpu.memory_space<vmem>>, vector<32x128xbf16>
    %c0_7 = arith.constant 0 : index
    %c0_8 = arith.constant 0 : index
    %c0_9 = arith.constant 0 : index
    %4 = vector.load %arg1[%c0_7, %c0_8, %c0_9] : memref<8x16x16xbf16, #tpu.memory_space<vmem>>, vector<8x16x16xbf16>
    %5 = vector.shape_cast %4 : vector<8x16x16xbf16> to vector<128x16xbf16>
    %cst = arith.constant dense<0.000000e+00> : vector<128x256xf32>
    %6 = tpu.matmul %5, %0, %cst {dimension_numbers = #tpu.dot_dimension_numbers<[1], [0], [0], [1], [0, 0, 1, 1], [], []>} : vector<128x16xbf16>, vector<16x256xbf16>, vector<128x256xf32> -> vector<128x256xf32>
    %7 = vector.broadcast %1 : vector<1x256xf32> to vector<128x256xf32>
    %8 = arith.addf %6, %7 : vector<128x256xf32>
    %9 = vector.shape_cast %8 : vector<128x256xf32> to vector<8x16x256xf32>
    %10 = arith.truncf %9 : vector<8x16x256xf32> to vector<8x16x256xbf16>
    %c0_10 = arith.constant 0 : index
    %c0_11 = arith.constant 0 : index
    %c0_12 = arith.constant 0 : index
    %11 = vector.load %arg7[%c0_10, %c0_11, %c0_12] : memref<8x16x256xbf16, #tpu.memory_space<vmem>>, vector<8x16x256xbf16>
    tpu.vector_store %arg7[%c0_10, %c0_11, %c0_12], %10 {strides = array<i32>} : memref<8x16x256xbf16, #tpu.memory_space<vmem>>, vector<8x16x256xbf16>,
    %cst_13 = arith.constant 0.000000e+00 : f32
    %12 = vector.broadcast %cst_13 : f32 to vector<16x32xf32>
    %c0_i32 = arith.constant 0 : i32
    %c7_i32 = arith.constant 7 : i32
    %13 = arith.subi %c7_i32, %c0_i32 : i32
    %14 = arith.index_cast %c0_i32 : i32 to index
    %c0_14 = arith.constant 0 : index
    %c0_15 = arith.constant 0 : index
    %15 = vector.load %arg7[%14, %c0_14, %c0_15] : memref<8x16x256xbf16, #tpu.memory_space<vmem>>, vector<1x16x128xbf16>
    %16 = vector.shape_cast %15 : vector<1x16x128xbf16> to vector<16x128xbf16>
    %17 = arith.truncf %12 : vector<16x32xf32> to vector<16x32xbf16>
    %cst_16 = arith.constant dense<0.000000e+00> : vector<16x128xf32>
    %18 = tpu.matmul %17, %2, %cst_16 {dimension_numbers = #tpu.dot_dimension_numbers<[1], [0], [0], [1], [0, 0, 1, 1], [], []>} : vector<16x32xbf16>, vector<32x128xbf16>, vector<16x128xf32> -> vector<16x128xf32>
    %19 = arith.extf %16 : vector<16x128xbf16> to vector<16x128xf32>
    %20 = arith.addf %19, %18 : vector<16x128xf32>
    %21 = arith.index_cast %13 : i32 to index
    %c0_17 = arith.constant 0 : index
    %c128 = arith.constant 128 : index
    %22 = vector.load %arg7[%21, %c0_17, %c128] : memref<8x16x256xbf16, #tpu.memory_space<vmem>>, vector<1x16x128xbf16>
    %23 = vector.shape_cast %22 : vector<1x16x128xbf16> to vector<16x128xbf16>
    %24 = arith.truncf %12 : vector<16x32xf32> to vector<16x32xbf16>
    %cst_18 = arith.constant dense<0.000000e+00> : vector<16x128xf32>
    %25 = tpu.matmul %24, %3, %cst_18 {dimension_numbers = #tpu.dot_dimension_numbers<[1], [0], [0], [1], [0, 0, 1, 1], [], []>} : vector<16x32xbf16>, vector<32x128xbf16>, vector<16x128xf32> -> vector<16x128xf32>
    %26 = arith.extf %23 : vector<16x128xbf16> to vector<16x128xf32>
    %27 = arith.addf %26, %25 : vector<16x128xf32>
    %28 = vector.extract_strided_slice %20 {offsets = [0, 0], sizes = [16, 32], strides = [1, 1]} : vector<16x128xf32> to vector<16x32xf32>
    %29 = arith.negf %28 : vector<16x32xf32>
    %30 = math.exp %29 : vector<16x32xf32>
    %cst_19 = arith.constant 1.000000e+00 : f32
    %31 = vector.broadcast %cst_19 : f32 to vector<16x32xf32>
    %32 = arith.addf %31, %30 : vector<16x32xf32>
    %33 = arith.divf %31, %32 : vector<16x32xf32>
    %34 = vector.extract_strided_slice %20 {offsets = [0, 32], sizes = [16, 32], strides = [1, 1]} : vector<16x128xf32> to vector<16x32xf32>
    %35 = arith.negf %34 : vector<16x32xf32>
    %36 = math.exp %35 : vector<16x32xf32>
    %cst_20 = arith.constant 1.000000e+00 : f32
    %37 = vector.broadcast %cst_20 : f32 to vector<16x32xf32>
    %38 = arith.addf %37, %36 : vector<16x32xf32>
    %39 = arith.divf %37, %38 : vector<16x32xf32>
    %40 = vector.extract_strided_slice %20 {offsets = [0, 64], sizes = [16, 32], strides = [1, 1]} : vector<16x128xf32> to vector<16x32xf32>
    %41 = math.tanh %40 : vector<16x32xf32>
    %42 = vector.extract_strided_slice %20 {offsets = [0, 96], sizes = [16, 32], strides = [1, 1]} : vector<16x128xf32> to vector<16x32xf32>
    %43 = arith.negf %42 : vector<16x32xf32>
    %44 = math.exp %43 : vector<16x32xf32>
    %cst_21 = arith.constant 1.000000e+00 : f32
    %45 = vector.broadcast %cst_21 : f32 to vector<16x32xf32>
    %46 = arith.addf %45, %44 : vector<16x32xf32>
    %47 = arith.divf %45, %46 : vector<16x32xf32>
    %48 = arith.mulf %39, %12 : vector<16x32xf32>
    %49 = arith.mulf %33, %41 : vector<16x32xf32>
    %50 = arith.addf %48, %49 : vector<16x32xf32>
    %51 = math.tanh %50 : vector<16x32xf32>
    %52 = arith.mulf %47, %51 : vector<16x32xf32>
    %53 = vector.extract_strided_slice %27 {offsets = [0, 0], sizes = [16, 32], strides = [1, 1]} : vector<16x128xf32> to vector<16x32xf32>
    %54 = arith.negf %53 : vector<16x32xf32>
    %55 = math.exp %54 : vector<16x32xf32>
    %cst_22 = arith.constant 1.000000e+00 : f32
    %56 = vector.broadcast %cst_22 : f32 to vector<16x32xf32>
    %57 = arith.addf %56, %55 : vector<16x32xf32>
    %58 = arith.divf %56, %57 : vector<16x32xf32>
    %59 = vector.extract_strided_slice %27 {offsets = [0, 32], sizes = [16, 32], strides = [1, 1]} : vector<16x128xf32> to vector<16x32xf32>
    %60 = arith.negf %59 : vector<16x32xf32>
    %61 = math.exp %60 : vector<16x32xf32>
    %cst_23 = arith.constant 1.000000e+00 : f32
    %62 = vector.broadcast %cst_23 : f32 to vector<16x32xf32>
    %63 = arith.addf %62, %61 : vector<16x32xf32>
    %64 = arith.divf %62, %63 : vector<16x32xf32>
    %65 = vector.extract_strided_slice %27 {offsets = [0, 64], sizes = [16, 32], strides = [1, 1]} : vector<16x128xf32> to vector<16x32xf32>
    %66 = math.tanh %65 : vector<16x32xf32>
    %67 = vector.extract_strided_slice %27 {offsets = [0, 96], sizes = [16, 32], strides = [1, 1]} : vector<16x128xf32> to vector<16x32xf32>
    %68 = arith.negf %67 : vector<16x32xf32>
    %69 = math.exp %68 : vector<16x32xf32>
    %cst_24 = arith.constant 1.000000e+00 : f32
    %70 = vector.broadcast %cst_24 : f32 to vector<16x32xf32>
    %71 = arith.addf %70, %69 : vector<16x32xf32>
    %72 = arith.divf %70, %71 : vector<16x32xf32>
    %73 = arith.mulf %64, %12 : vector<16x32xf32>
    %74 = arith.mulf %58, %66 : vector<16x32xf32>
    %75 = arith.addf %73, %74 : vector<16x32xf32>
    %76 = math.tanh %75 : vector<16x32xf32>
    %77 = arith.mulf %72, %76 : vector<16x32xf32>
    %c1_i32 = arith.constant 1 : i32
    %c7_i32_25 = arith.constant 7 : i32
    %78 = arith.subi %c7_i32_25, %c1_i32 : i32
    %79 = arith.index_cast %c1_i32 : i32 to index
    %c0_26 = arith.constant 0 : index
    %c0_27 = arith.constant 0 : index
    %80 = vector.load %arg7[%79, %c0_26, %c0_27] : memref<8x16x256xbf16, #tpu.memory_space<vmem>>, vector<1x16x128xbf16>
    %81 = vector.shape_cast %80 : vector<1x16x128xbf16> to vector<16x128xbf16>
    %82 = arith.truncf %52 : vector<16x32xf32> to vector<16x32xbf16>
    %cst_28 = arith.constant dense<0.000000e+00> : vector<16x128xf32>
    %83 = tpu.matmul %82, %2, %cst_28 {dimension_numbers = #tpu.dot_dimension_numbers<[1], [0], [0], [1], [0, 0, 1, 1], [], []>} : vector<16x32xbf16>, vector<32x128xbf16>, vector<16x128xf32> -> vector<16x128xf32>
    %84 = arith.extf %81 : vector<16x128xbf16> to vector<16x128xf32>
    %85 = arith.addf %84, %83 : vector<16x128xf32>
    %86 = arith.index_cast %78 : i32 to index
    %c0_29 = arith.constant 0 : index
    %c128_30 = arith.constant 128 : index
    %87 = vector.load %arg7[%86, %c0_29, %c128_30] : memref<8x16x256xbf16, #tpu.memory_space<vmem>>, vector<1x16x128xbf16>
    %88 = vector.shape_cast %87 : vector<1x16x128xbf16> to vector<16x128xbf16>
    %89 = arith.truncf %77 : vector<16x32xf32> to vector<16x32xbf16>
    %cst_31 = arith.constant dense<0.000000e+00> : vector<16x128xf32>
    %90 = tpu.matmul %89, %3, %cst_31 {dimension_numbers = #tpu.dot_dimension_numbers<[1], [0], [0], [1], [0, 0, 1, 1], [], []>} : vector<16x32xbf16>, vector<32x128xbf16>, vector<16x128xf32> -> vector<16x128xf32>
    %91 = arith.extf %88 : vector<16x128xbf16> to vector<16x128xf32>
    %92 = arith.addf %91, %90 : vector<16x128xf32>
    %93 = vector.extract_strided_slice %85 {offsets = [0, 0], sizes = [16, 32], strides = [1, 1]} : vector<16x128xf32> to vector<16x32xf32>
    %94 = arith.negf %93 : vector<16x32xf32>
    %95 = math.exp %94 : vector<16x32xf32>
    %cst_32 = arith.constant 1.000000e+00 : f32
    %96 = vector.broadcast %cst_32 : f32 to vector<16x32xf32>
    %97 = arith.addf %96, %95 : vector<16x32xf32>
    %98 = arith.divf %96, %97 : vector<16x32xf32>
    %99 = vector.extract_strided_slice %85 {offsets = [0, 32], sizes = [16, 32], strides = [1, 1]} : vector<16x128xf32> to vector<16x32xf32>
    %100 = arith.negf %99 : vector<16x32xf32>
    %101 = math.exp %100 : vector<16x32xf32>
    %cst_33 = arith.constant 1.000000e+00 : f32
    %102 = vector.broadcast %cst_33 : f32 to vector<16x32xf32>
    %103 = arith.addf %102, %101 : vector<16x32xf32>
    %104 = arith.divf %102, %103 : vector<16x32xf32>
    %105 = vector.extract_strided_slice %85 {offsets = [0, 64], sizes = [16, 32], strides = [1, 1]} : vector<16x128xf32> to vector<16x32xf32>
    %106 = math.tanh %105 : vector<16x32xf32>
    %107 = vector.extract_strided_slice %85 {offsets = [0, 96], sizes = [16, 32], strides = [1, 1]} : vector<16x128xf32> to vector<16x32xf32>
    %108 = arith.negf %107 : vector<16x32xf32>
    %109 = math.exp %108 : vector<16x32xf32>
    %cst_34 = arith.constant 1.000000e+00 : f32
    %110 = vector.broadcast %cst_34 : f32 to vector<16x32xf32>
    %111 = arith.addf %110, %109 : vector<16x32xf32>
    %112 = arith.divf %110, %111 : vector<16x32xf32>
    %113 = arith.mulf %104, %50 : vector<16x32xf32>
    %114 = arith.mulf %98, %106 : vector<16x32xf32>
    %115 = arith.addf %113, %114 : vector<16x32xf32>
    %116 = math.tanh %115 : vector<16x32xf32>
    %117 = arith.mulf %112, %116 : vector<16x32xf32>
    %118 = vector.extract_strided_slice %92 {offsets = [0, 0], sizes = [16, 32], strides = [1, 1]} : vector<16x128xf32> to vector<16x32xf32>
    %119 = arith.negf %118 : vector<16x32xf32>
    %120 = math.exp %119 : vector<16x32xf32>
    %cst_35 = arith.constant 1.000000e+00 : f32
    %121 = vector.broadcast %cst_35 : f32 to vector<16x32xf32>
    %122 = arith.addf %121, %120 : vector<16x32xf32>
    %123 = arith.divf %121, %122 : vector<16x32xf32>
    %124 = vector.extract_strided_slice %92 {offsets = [0, 32], sizes = [16, 32], strides = [1, 1]} : vector<16x128xf32> to vector<16x32xf32>
    %125 = arith.negf %124 : vector<16x32xf32>
    %126 = math.exp %125 : vector<16x32xf32>
    %cst_36 = arith.constant 1.000000e+00 : f32
    %127 = vector.broadcast %cst_36 : f32 to vector<16x32xf32>
    %128 = arith.addf %127, %126 : vector<16x32xf32>
    %129 = arith.divf %127, %128 : vector<16x32xf32>
    %130 = vector.extract_strided_slice %92 {offsets = [0, 64], sizes = [16, 32], strides = [1, 1]} : vector<16x128xf32> to vector<16x32xf32>
    %131 = math.tanh %130 : vector<16x32xf32>
    %132 = vector.extract_strided_slice %92 {offsets = [0, 96], sizes = [16, 32], strides = [1, 1]} : vector<16x128xf32> to vector<16x32xf32>
    %133 = arith.negf %132 : vector<16x32xf32>
    %134 = math.exp %133 : vector<16x32xf32>
    %cst_37 = arith.constant 1.000000e+00 : f32
    %135 = vector.broadcast %cst_37 : f32 to vector<16x32xf32>
    %136 = arith.addf %135, %134 : vector<16x32xf32>
    %137 = arith.divf %135, %136 : vector<16x32xf32>
    %138 = arith.mulf %129, %75 : vector<16x32xf32>
    %139 = arith.mulf %123, %131 : vector<16x32xf32>
    %140 = arith.addf %138, %139 : vector<16x32xf32>
    %141 = math.tanh %140 : vector<16x32xf32>
    %142 = arith.mulf %137, %141 : vector<16x32xf32>
    %c2_i32 = arith.constant 2 : i32
    %c7_i32_38 = arith.constant 7 : i32
    %143 = arith.subi %c7_i32_38, %c2_i32 : i32
    %144 = arith.index_cast %c2_i32 : i32 to index
    %c0_39 = arith.constant 0 : index
    %c0_40 = arith.constant 0 : index
    %145 = vector.load %arg7[%144, %c0_39, %c0_40] : memref<8x16x256xbf16, #tpu.memory_space<vmem>>, vector<1x16x128xbf16>
    %146 = vector.shape_cast %145 : vector<1x16x128xbf16> to vector<16x128xbf16>
    %147 = arith.truncf %117 : vector<16x32xf32> to vector<16x32xbf16>
    %cst_41 = arith.constant dense<0.000000e+00> : vector<16x128xf32>
    %148 = tpu.matmul %147, %2, %cst_41 {dimension_numbers = #tpu.dot_dimension_numbers<[1], [0], [0], [1], [0, 0, 1, 1], [], []>} : vector<16x32xbf16>, vector<32x128xbf16>, vector<16x128xf32> -> vector<16x128xf32>
    %149 = arith.extf %146 : vector<16x128xbf16> to vector<16x128xf32>
    %150 = arith.addf %149, %148 : vector<16x128xf32>
    %151 = arith.index_cast %143 : i32 to index
    %c0_42 = arith.constant 0 : index
    %c128_43 = arith.constant 128 : index
    %152 = vector.load %arg7[%151, %c0_42, %c128_43] : memref<8x16x256xbf16, #tpu.memory_space<vmem>>, vector<1x16x128xbf16>
    %153 = vector.shape_cast %152 : vector<1x16x128xbf16> to vector<16x128xbf16>
    %154 = arith.truncf %142 : vector<16x32xf32> to vector<16x32xbf16>
    %cst_44 = arith.constant dense<0.000000e+00> : vector<16x128xf32>
    %155 = tpu.matmul %154, %3, %cst_44 {dimension_numbers = #tpu.dot_dimension_numbers<[1], [0], [0], [1], [0, 0, 1, 1], [], []>} : vector<16x32xbf16>, vector<32x128xbf16>, vector<16x128xf32> -> vector<16x128xf32>
    %156 = arith.extf %153 : vector<16x128xbf16> to vector<16x128xf32>
    %157 = arith.addf %156, %155 : vector<16x128xf32>
    %158 = vector.extract_strided_slice %150 {offsets = [0, 0], sizes = [16, 32], strides = [1, 1]} : vector<16x128xf32> to vector<16x32xf32>
    %159 = arith.negf %158 : vector<16x32xf32>
    %160 = math.exp %159 : vector<16x32xf32>
    %cst_45 = arith.constant 1.000000e+00 : f32
    %161 = vector.broadcast %cst_45 : f32 to vector<16x32xf32>
    %162 = arith.addf %161, %160 : vector<16x32xf32>
    %163 = arith.divf %161, %162 : vector<16x32xf32>
    %164 = vector.extract_strided_slice %150 {offsets = [0, 32], sizes = [16, 32], strides = [1, 1]} : vector<16x128xf32> to vector<16x32xf32>
    %165 = arith.negf %164 : vector<16x32xf32>
    %166 = math.exp %165 : vector<16x32xf32>
    %cst_46 = arith.constant 1.000000e+00 : f32
    %167 = vector.broadcast %cst_46 : f32 to vector<16x32xf32>
    %168 = arith.addf %167, %166 : vector<16x32xf32>
    %169 = arith.divf %167, %168 : vector<16x32xf32>
    %170 = vector.extract_strided_slice %150 {offsets = [0, 64], sizes = [16, 32], strides = [1, 1]} : vector<16x128xf32> to vector<16x32xf32>
    %171 = math.tanh %170 : vector<16x32xf32>
    %172 = vector.extract_strided_slice %150 {offsets = [0, 96], sizes = [16, 32], strides = [1, 1]} : vector<16x128xf32> to vector<16x32xf32>
    %173 = arith.negf %172 : vector<16x32xf32>
    %174 = math.exp %173 : vector<16x32xf32>
    %cst_47 = arith.constant 1.000000e+00 : f32
    %175 = vector.broadcast %cst_47 : f32 to vector<16x32xf32>
    %176 = arith.addf %175, %174 : vector<16x32xf32>
    %177 = arith.divf %175, %176 : vector<16x32xf32>
    %178 = arith.mulf %169, %115 : vector<16x32xf32>
    %179 = arith.mulf %163, %171 : vector<16x32xf32>
    %180 = arith.addf %178, %179 : vector<16x32xf32>
    %181 = math.tanh %180 : vector<16x32xf32>
    %182 = arith.mulf %177, %181 : vector<16x32xf32>
    %183 = vector.extract_strided_slice %157 {offsets = [0, 0], sizes = [16, 32], strides = [1, 1]} : vector<16x128xf32> to vector<16x32xf32>
    %184 = arith.negf %183 : vector<16x32xf32>
    %185 = math.exp %184 : vector<16x32xf32>
    %cst_48 = arith.constant 1.000000e+00 : f32
    %186 = vector.broadcast %cst_48 : f32 to vector<16x32xf32>
    %187 = arith.addf %186, %185 : vector<16x32xf32>
    %188 = arith.divf %186, %187 : vector<16x32xf32>
    %189 = vector.extract_strided_slice %157 {offsets = [0, 32], sizes = [16, 32], strides = [1, 1]} : vector<16x128xf32> to vector<16x32xf32>
    %190 = arith.negf %189 : vector<16x32xf32>
    %191 = math.exp %190 : vector<16x32xf32>
    %cst_49 = arith.constant 1.000000e+00 : f32
    %192 = vector.broadcast %cst_49 : f32 to vector<16x32xf32>
    %193 = arith.addf %192, %191 : vector<16x32xf32>
    %194 = arith.divf %192, %193 : vector<16x32xf32>
    %195 = vector.extract_strided_slice %157 {offsets = [0, 64], sizes = [16, 32], strides = [1, 1]} : vector<16x128xf32> to vector<16x32xf32>
    %196 = math.tanh %195 : vector<16x32xf32>
    %197 = vector.extract_strided_slice %157 {offsets = [0, 96], sizes = [16, 32], strides = [1, 1]} : vector<16x128xf32> to vector<16x32xf32>
    %198 = arith.negf %197 : vector<16x32xf32>
    %199 = math.exp %198 : vector<16x32xf32>
    %cst_50 = arith.constant 1.000000e+00 : f32
    %200 = vector.broadcast %cst_50 : f32 to vector<16x32xf32>
    %201 = arith.addf %200, %199 : vector<16x32xf32>
    %202 = arith.divf %200, %201 : vector<16x32xf32>
    %203 = arith.mulf %194, %140 : vector<16x32xf32>
    %204 = arith.mulf %188, %196 : vector<16x32xf32>
    %205 = arith.addf %203, %204 : vector<16x32xf32>
    %206 = math.tanh %205 : vector<16x32xf32>
    %207 = arith.mulf %202, %206 : vector<16x32xf32>
    %c3_i32 = arith.constant 3 : i32
    %c7_i32_51 = arith.constant 7 : i32
    %208 = arith.subi %c7_i32_51, %c3_i32 : i32
    %209 = arith.index_cast %c3_i32 : i32 to index
    %c0_52 = arith.constant 0 : index
    %c0_53 = arith.constant 0 : index
    %210 = vector.load %arg7[%209, %c0_52, %c0_53] : memref<8x16x256xbf16, #tpu.memory_space<vmem>>, vector<1x16x128xbf16>
    %211 = vector.shape_cast %210 : vector<1x16x128xbf16> to vector<16x128xbf16>
    %212 = arith.truncf %182 : vector<16x32xf32> to vector<16x32xbf16>
    %cst_54 = arith.constant dense<0.000000e+00> : vector<16x128xf32>
    %213 = tpu.matmul %212, %2, %cst_54 {dimension_numbers = #tpu.dot_dimension_numbers<[1], [0], [0], [1], [0, 0, 1, 1], [], []>} : vector<16x32xbf16>, vector<32x128xbf16>, vector<16x128xf32> -> vector<16x128xf32>
    %214 = arith.extf %211 : vector<16x128xbf16> to vector<16x128xf32>
    %215 = arith.addf %214, %213 : vector<16x128xf32>
    %216 = arith.index_cast %208 : i32 to index
    %c0_55 = arith.constant 0 : index
    %c128_56 = arith.constant 128 : index
    %217 = vector.load %arg7[%216, %c0_55, %c128_56] : memref<8x16x256xbf16, #tpu.memory_space<vmem>>, vector<1x16x128xbf16>
    %218 = vector.shape_cast %217 : vector<1x16x128xbf16> to vector<16x128xbf16>
    %219 = arith.truncf %207 : vector<16x32xf32> to vector<16x32xbf16>
    %cst_57 = arith.constant dense<0.000000e+00> : vector<16x128xf32>
    %220 = tpu.matmul %219, %3, %cst_57 {dimension_numbers = #tpu.dot_dimension_numbers<[1], [0], [0], [1], [0, 0, 1, 1], [], []>} : vector<16x32xbf16>, vector<32x128xbf16>, vector<16x128xf32> -> vector<16x128xf32>
    %221 = arith.extf %218 : vector<16x128xbf16> to vector<16x128xf32>
    %222 = arith.addf %221, %220 : vector<16x128xf32>
    %223 = vector.extract_strided_slice %215 {offsets = [0, 0], sizes = [16, 32], strides = [1, 1]} : vector<16x128xf32> to vector<16x32xf32>
    %224 = arith.negf %223 : vector<16x32xf32>
    %225 = math.exp %224 : vector<16x32xf32>
    %cst_58 = arith.constant 1.000000e+00 : f32
    %226 = vector.broadcast %cst_58 : f32 to vector<16x32xf32>
    %227 = arith.addf %226, %225 : vector<16x32xf32>
    %228 = arith.divf %226, %227 : vector<16x32xf32>
    %229 = vector.extract_strided_slice %215 {offsets = [0, 32], sizes = [16, 32], strides = [1, 1]} : vector<16x128xf32> to vector<16x32xf32>
    %230 = arith.negf %229 : vector<16x32xf32>
    %231 = math.exp %230 : vector<16x32xf32>
    %cst_59 = arith.constant 1.000000e+00 : f32
    %232 = vector.broadcast %cst_59 : f32 to vector<16x32xf32>
    %233 = arith.addf %232, %231 : vector<16x32xf32>
    %234 = arith.divf %232, %233 : vector<16x32xf32>
    %235 = vector.extract_strided_slice %215 {offsets = [0, 64], sizes = [16, 32], strides = [1, 1]} : vector<16x128xf32> to vector<16x32xf32>
    %236 = math.tanh %235 : vector<16x32xf32>
    %237 = vector.extract_strided_slice %215 {offsets = [0, 96], sizes = [16, 32], strides = [1, 1]} : vector<16x128xf32> to vector<16x32xf32>
    %238 = arith.negf %237 : vector<16x32xf32>
    %239 = math.exp %238 : vector<16x32xf32>
    %cst_60 = arith.constant 1.000000e+00 : f32
    %240 = vector.broadcast %cst_60 : f32 to vector<16x32xf32>
    %241 = arith.addf %240, %239 : vector<16x32xf32>
    %242 = arith.divf %240, %241 : vector<16x32xf32>
    %243 = arith.mulf %234, %180 : vector<16x32xf32>
    %244 = arith.mulf %228, %236 : vector<16x32xf32>
    %245 = arith.addf %243, %244 : vector<16x32xf32>
    %246 = math.tanh %245 : vector<16x32xf32>
    %247 = arith.mulf %242, %246 : vector<16x32xf32>
    %248 = vector.extract_strided_slice %222 {offsets = [0, 0], sizes = [16, 32], strides = [1, 1]} : vector<16x128xf32> to vector<16x32xf32>
    %249 = arith.negf %248 : vector<16x32xf32>
    %250 = math.exp %249 : vector<16x32xf32>
    %cst_61 = arith.constant 1.000000e+00 : f32
    %251 = vector.broadcast %cst_61 : f32 to vector<16x32xf32>
    %252 = arith.addf %251, %250 : vector<16x32xf32>
    %253 = arith.divf %251, %252 : vector<16x32xf32>
    %254 = vector.extract_strided_slice %222 {offsets = [0, 32], sizes = [16, 32], strides = [1, 1]} : vector<16x128xf32> to vector<16x32xf32>
    %255 = arith.negf %254 : vector<16x32xf32>
    %256 = math.exp %255 : vector<16x32xf32>
    %cst_62 = arith.constant 1.000000e+00 : f32
    %257 = vector.broadcast %cst_62 : f32 to vector<16x32xf32>
    %258 = arith.addf %257, %256 : vector<16x32xf32>
    %259 = arith.divf %257, %258 : vector<16x32xf32>
    %260 = vector.extract_strided_slice %222 {offsets = [0, 64], sizes = [16, 32], strides = [1, 1]} : vector<16x128xf32> to vector<16x32xf32>
    %261 = math.tanh %260 : vector<16x32xf32>
    %262 = vector.extract_strided_slice %222 {offsets = [0, 96], sizes = [16, 32], strides = [1, 1]} : vector<16x128xf32> to vector<16x32xf32>
    %263 = arith.negf %262 : vector<16x32xf32>
    %264 = math.exp %263 : vector<16x32xf32>
    %cst_63 = arith.constant 1.000000e+00 : f32
    %265 = vector.broadcast %cst_63 : f32 to vector<16x32xf32>
    %266 = arith.addf %265, %264 : vector<16x32xf32>
    %267 = arith.divf %265, %266 : vector<16x32xf32>
    %268 = arith.mulf %259, %205 : vector<16x32xf32>
    %269 = arith.mulf %253, %261 : vector<16x32xf32>
    %270 = arith.addf %268, %269 : vector<16x32xf32>
    %271 = math.tanh %270 : vector<16x32xf32>
    %272 = arith.mulf %267, %271 : vector<16x32xf32>
    %c4_i32 = arith.constant 4 : i32
    %c7_i32_64 = arith.constant 7 : i32
    %273 = arith.subi %c7_i32_64, %c4_i32 : i32
    %274 = arith.index_cast %c4_i32 : i32 to index
    %c0_65 = arith.constant 0 : index
    %c0_66 = arith.constant 0 : index
    %275 = vector.load %arg7[%274, %c0_65, %c0_66] : memref<8x16x256xbf16, #tpu.memory_space<vmem>>, vector<1x16x128xbf16>
    %276 = vector.shape_cast %275 : vector<1x16x128xbf16> to vector<16x128xbf16>
    %277 = arith.truncf %247 : vector<16x32xf32> to vector<16x32xbf16>
    %cst_67 = arith.constant dense<0.000000e+00> : vector<16x128xf32>
    %278 = tpu.matmul %277, %2, %cst_67 {dimension_numbers = #tpu.dot_dimension_numbers<[1], [0], [0], [1], [0, 0, 1, 1], [], []>} : vector<16x32xbf16>, vector<32x128xbf16>, vector<16x128xf32> -> vector<16x128xf32>
    %279 = arith.extf %276 : vector<16x128xbf16> to vector<16x128xf32>
    %280 = arith.addf %279, %278 : vector<16x128xf32>
    %281 = arith.index_cast %273 : i32 to index
    %c0_68 = arith.constant 0 : index
    %c128_69 = arith.constant 128 : index
    %282 = vector.load %arg7[%281, %c0_68, %c128_69] : memref<8x16x256xbf16, #tpu.memory_space<vmem>>, vector<1x16x128xbf16>
    %283 = vector.shape_cast %282 : vector<1x16x128xbf16> to vector<16x128xbf16>
    %284 = arith.truncf %272 : vector<16x32xf32> to vector<16x32xbf16>
    %cst_70 = arith.constant dense<0.000000e+00> : vector<16x128xf32>
    %285 = tpu.matmul %284, %3, %cst_70 {dimension_numbers = #tpu.dot_dimension_numbers<[1], [0], [0], [1], [0, 0, 1, 1], [], []>} : vector<16x32xbf16>, vector<32x128xbf16>, vector<16x128xf32> -> vector<16x128xf32>
    %286 = arith.extf %283 : vector<16x128xbf16> to vector<16x128xf32>
    %287 = arith.addf %286, %285 : vector<16x128xf32>
    %288 = vector.extract_strided_slice %280 {offsets = [0, 0], sizes = [16, 32], strides = [1, 1]} : vector<16x128xf32> to vector<16x32xf32>
    %289 = arith.negf %288 : vector<16x32xf32>
    %290 = math.exp %289 : vector<16x32xf32>
    %cst_71 = arith.constant 1.000000e+00 : f32
    %291 = vector.broadcast %cst_71 : f32 to vector<16x32xf32>
    %292 = arith.addf %291, %290 : vector<16x32xf32>
    %293 = arith.divf %291, %292 : vector<16x32xf32>
    %294 = vector.extract_strided_slice %280 {offsets = [0, 32], sizes = [16, 32], strides = [1, 1]} : vector<16x128xf32> to vector<16x32xf32>
    %295 = arith.negf %294 : vector<16x32xf32>
    %296 = math.exp %295 : vector<16x32xf32>
    %cst_72 = arith.constant 1.000000e+00 : f32
    %297 = vector.broadcast %cst_72 : f32 to vector<16x32xf32>
    %298 = arith.addf %297, %296 : vector<16x32xf32>
    %299 = arith.divf %297, %298 : vector<16x32xf32>
    %300 = vector.extract_strided_slice %280 {offsets = [0, 64], sizes = [16, 32], strides = [1, 1]} : vector<16x128xf32> to vector<16x32xf32>
    %301 = math.tanh %300 : vector<16x32xf32>
    %302 = vector.extract_strided_slice %280 {offsets = [0, 96], sizes = [16, 32], strides = [1, 1]} : vector<16x128xf32> to vector<16x32xf32>
    %303 = arith.negf %302 : vector<16x32xf32>
    %304 = math.exp %303 : vector<16x32xf32>
    %cst_73 = arith.constant 1.000000e+00 : f32
    %305 = vector.broadcast %cst_73 : f32 to vector<16x32xf32>
    %306 = arith.addf %305, %304 : vector<16x32xf32>
    %307 = arith.divf %305, %306 : vector<16x32xf32>
    %308 = arith.mulf %299, %245 : vector<16x32xf32>
    %309 = arith.mulf %293, %301 : vector<16x32xf32>
    %310 = arith.addf %308, %309 : vector<16x32xf32>
    %311 = math.tanh %310 : vector<16x32xf32>
    %312 = arith.mulf %307, %311 : vector<16x32xf32>
    %313 = vector.extract_strided_slice %287 {offsets = [0, 0], sizes = [16, 32], strides = [1, 1]} : vector<16x128xf32> to vector<16x32xf32>
    %314 = arith.negf %313 : vector<16x32xf32>
    %315 = math.exp %314 : vector<16x32xf32>
    %cst_74 = arith.constant 1.000000e+00 : f32
    %316 = vector.broadcast %cst_74 : f32 to vector<16x32xf32>
    %317 = arith.addf %316, %315 : vector<16x32xf32>
    %318 = arith.divf %316, %317 : vector<16x32xf32>
    %319 = vector.extract_strided_slice %287 {offsets = [0, 32], sizes = [16, 32], strides = [1, 1]} : vector<16x128xf32> to vector<16x32xf32>
    %320 = arith.negf %319 : vector<16x32xf32>
    %321 = math.exp %320 : vector<16x32xf32>
    %cst_75 = arith.constant 1.000000e+00 : f32
    %322 = vector.broadcast %cst_75 : f32 to vector<16x32xf32>
    %323 = arith.addf %322, %321 : vector<16x32xf32>
    %324 = arith.divf %322, %323 : vector<16x32xf32>
    %325 = vector.extract_strided_slice %287 {offsets = [0, 64], sizes = [16, 32], strides = [1, 1]} : vector<16x128xf32> to vector<16x32xf32>
    %326 = math.tanh %325 : vector<16x32xf32>
    %327 = vector.extract_strided_slice %287 {offsets = [0, 96], sizes = [16, 32], strides = [1, 1]} : vector<16x128xf32> to vector<16x32xf32>
    %328 = arith.negf %327 : vector<16x32xf32>
    %329 = math.exp %328 : vector<16x32xf32>
    %cst_76 = arith.constant 1.000000e+00 : f32
    %330 = vector.broadcast %cst_76 : f32 to vector<16x32xf32>
    %331 = arith.addf %330, %329 : vector<16x32xf32>
    %332 = arith.divf %330, %331 : vector<16x32xf32>
    %333 = arith.mulf %324, %270 : vector<16x32xf32>
    %334 = arith.mulf %318, %326 : vector<16x32xf32>
    %335 = arith.addf %333, %334 : vector<16x32xf32>
    %336 = math.tanh %335 : vector<16x32xf32>
    %337 = arith.mulf %332, %336 : vector<16x32xf32>
    %c5_i32 = arith.constant 5 : i32
    %c7_i32_77 = arith.constant 7 : i32
    %338 = arith.subi %c7_i32_77, %c5_i32 : i32
    %339 = arith.index_cast %c5_i32 : i32 to index
    %c0_78 = arith.constant 0 : index
    %c0_79 = arith.constant 0 : index
    %340 = vector.load %arg7[%339, %c0_78, %c0_79] : memref<8x16x256xbf16, #tpu.memory_space<vmem>>, vector<1x16x128xbf16>
    %341 = vector.shape_cast %340 : vector<1x16x128xbf16> to vector<16x128xbf16>
    %342 = arith.truncf %312 : vector<16x32xf32> to vector<16x32xbf16>
    %cst_80 = arith.constant dense<0.000000e+00> : vector<16x128xf32>
    %343 = tpu.matmul %342, %2, %cst_80 {dimension_numbers = #tpu.dot_dimension_numbers<[1], [0], [0], [1], [0, 0, 1, 1], [], []>} : vector<16x32xbf16>, vector<32x128xbf16>, vector<16x128xf32> -> vector<16x128xf32>
    %344 = arith.extf %341 : vector<16x128xbf16> to vector<16x128xf32>
    %345 = arith.addf %344, %343 : vector<16x128xf32>
    %346 = arith.index_cast %338 : i32 to index
    %c0_81 = arith.constant 0 : index
    %c128_82 = arith.constant 128 : index
    %347 = vector.load %arg7[%346, %c0_81, %c128_82] : memref<8x16x256xbf16, #tpu.memory_space<vmem>>, vector<1x16x128xbf16>
    %348 = vector.shape_cast %347 : vector<1x16x128xbf16> to vector<16x128xbf16>
    %349 = arith.truncf %337 : vector<16x32xf32> to vector<16x32xbf16>
    %cst_83 = arith.constant dense<0.000000e+00> : vector<16x128xf32>
    %350 = tpu.matmul %349, %3, %cst_83 {dimension_numbers = #tpu.dot_dimension_numbers<[1], [0], [0], [1], [0, 0, 1, 1], [], []>} : vector<16x32xbf16>, vector<32x128xbf16>, vector<16x128xf32> -> vector<16x128xf32>
    %351 = arith.extf %348 : vector<16x128xbf16> to vector<16x128xf32>
    %352 = arith.addf %351, %350 : vector<16x128xf32>
    %353 = vector.extract_strided_slice %345 {offsets = [0, 0], sizes = [16, 32], strides = [1, 1]} : vector<16x128xf32> to vector<16x32xf32>
    %354 = arith.negf %353 : vector<16x32xf32>
    %355 = math.exp %354 : vector<16x32xf32>
    %cst_84 = arith.constant 1.000000e+00 : f32
    %356 = vector.broadcast %cst_84 : f32 to vector<16x32xf32>
    %357 = arith.addf %356, %355 : vector<16x32xf32>
    %358 = arith.divf %356, %357 : vector<16x32xf32>
    %359 = vector.extract_strided_slice %345 {offsets = [0, 32], sizes = [16, 32], strides = [1, 1]} : vector<16x128xf32> to vector<16x32xf32>
    %360 = arith.negf %359 : vector<16x32xf32>
    %361 = math.exp %360 : vector<16x32xf32>
    %cst_85 = arith.constant 1.000000e+00 : f32
    %362 = vector.broadcast %cst_85 : f32 to vector<16x32xf32>
    %363 = arith.addf %362, %361 : vector<16x32xf32>
    %364 = arith.divf %362, %363 : vector<16x32xf32>
    %365 = vector.extract_strided_slice %345 {offsets = [0, 64], sizes = [16, 32], strides = [1, 1]} : vector<16x128xf32> to vector<16x32xf32>
    %366 = math.tanh %365 : vector<16x32xf32>
    %367 = vector.extract_strided_slice %345 {offsets = [0, 96], sizes = [16, 32], strides = [1, 1]} : vector<16x128xf32> to vector<16x32xf32>
    %368 = arith.negf %367 : vector<16x32xf32>
    %369 = math.exp %368 : vector<16x32xf32>
    %cst_86 = arith.constant 1.000000e+00 : f32
    %370 = vector.broadcast %cst_86 : f32 to vector<16x32xf32>
    %371 = arith.addf %370, %369 : vector<16x32xf32>
    %372 = arith.divf %370, %371 : vector<16x32xf32>
    %373 = arith.mulf %364, %310 : vector<16x32xf32>
    %374 = arith.mulf %358, %366 : vector<16x32xf32>
    %375 = arith.addf %373, %374 : vector<16x32xf32>
    %376 = math.tanh %375 : vector<16x32xf32>
    %377 = arith.mulf %372, %376 : vector<16x32xf32>
    %378 = vector.extract_strided_slice %352 {offsets = [0, 0], sizes = [16, 32], strides = [1, 1]} : vector<16x128xf32> to vector<16x32xf32>
    %379 = arith.negf %378 : vector<16x32xf32>
    %380 = math.exp %379 : vector<16x32xf32>
    %cst_87 = arith.constant 1.000000e+00 : f32
    %381 = vector.broadcast %cst_87 : f32 to vector<16x32xf32>
    %382 = arith.addf %381, %380 : vector<16x32xf32>
    %383 = arith.divf %381, %382 : vector<16x32xf32>
    %384 = vector.extract_strided_slice %352 {offsets = [0, 32], sizes = [16, 32], strides = [1, 1]} : vector<16x128xf32> to vector<16x32xf32>
    %385 = arith.negf %384 : vector<16x32xf32>
    %386 = math.exp %385 : vector<16x32xf32>
    %cst_88 = arith.constant 1.000000e+00 : f32
    %387 = vector.broadcast %cst_88 : f32 to vector<16x32xf32>
    %388 = arith.addf %387, %386 : vector<16x32xf32>
    %389 = arith.divf %387, %388 : vector<16x32xf32>
    %390 = vector.extract_strided_slice %352 {offsets = [0, 64], sizes = [16, 32], strides = [1, 1]} : vector<16x128xf32> to vector<16x32xf32>
    %391 = math.tanh %390 : vector<16x32xf32>
    %392 = vector.extract_strided_slice %352 {offsets = [0, 96], sizes = [16, 32], strides = [1, 1]} : vector<16x128xf32> to vector<16x32xf32>
    %393 = arith.negf %392 : vector<16x32xf32>
    %394 = math.exp %393 : vector<16x32xf32>
    %cst_89 = arith.constant 1.000000e+00 : f32
    %395 = vector.broadcast %cst_89 : f32 to vector<16x32xf32>
    %396 = arith.addf %395, %394 : vector<16x32xf32>
    %397 = arith.divf %395, %396 : vector<16x32xf32>
    %398 = arith.mulf %389, %335 : vector<16x32xf32>
    %399 = arith.mulf %383, %391 : vector<16x32xf32>
    %400 = arith.addf %398, %399 : vector<16x32xf32>
    %401 = math.tanh %400 : vector<16x32xf32>
    %402 = arith.mulf %397, %401 : vector<16x32xf32>
    %c6_i32 = arith.constant 6 : i32
    %c7_i32_90 = arith.constant 7 : i32
    %403 = arith.subi %c7_i32_90, %c6_i32 : i32
    %404 = arith.index_cast %c6_i32 : i32 to index
    %c0_91 = arith.constant 0 : index
    %c0_92 = arith.constant 0 : index
    %405 = vector.load %arg7[%404, %c0_91, %c0_92] : memref<8x16x256xbf16, #tpu.memory_space<vmem>>, vector<1x16x128xbf16>
    %406 = vector.shape_cast %405 : vector<1x16x128xbf16> to vector<16x128xbf16>
    %407 = arith.truncf %377 : vector<16x32xf32> to vector<16x32xbf16>
    %cst_93 = arith.constant dense<0.000000e+00> : vector<16x128xf32>
    %408 = tpu.matmul %407, %2, %cst_93 {dimension_numbers = #tpu.dot_dimension_numbers<[1], [0], [0], [1], [0, 0, 1, 1], [], []>} : vector<16x32xbf16>, vector<32x128xbf16>, vector<16x128xf32> -> vector<16x128xf32>
    %409 = arith.extf %406 : vector<16x128xbf16> to vector<16x128xf32>
    %410 = arith.addf %409, %408 : vector<16x128xf32>
    %411 = arith.index_cast %403 : i32 to index
    %c0_94 = arith.constant 0 : index
    %c128_95 = arith.constant 128 : index
    %412 = vector.load %arg7[%411, %c0_94, %c128_95] : memref<8x16x256xbf16, #tpu.memory_space<vmem>>, vector<1x16x128xbf16>
    %413 = vector.shape_cast %412 : vector<1x16x128xbf16> to vector<16x128xbf16>
    %414 = arith.truncf %402 : vector<16x32xf32> to vector<16x32xbf16>
    %cst_96 = arith.constant dense<0.000000e+00> : vector<16x128xf32>
    %415 = tpu.matmul %414, %3, %cst_96 {dimension_numbers = #tpu.dot_dimension_numbers<[1], [0], [0], [1], [0, 0, 1, 1], [], []>} : vector<16x32xbf16>, vector<32x128xbf16>, vector<16x128xf32> -> vector<16x128xf32>
    %416 = arith.extf %413 : vector<16x128xbf16> to vector<16x128xf32>
    %417 = arith.addf %416, %415 : vector<16x128xf32>
    %418 = vector.extract_strided_slice %410 {offsets = [0, 0], sizes = [16, 32], strides = [1, 1]} : vector<16x128xf32> to vector<16x32xf32>
    %419 = arith.negf %418 : vector<16x32xf32>
    %420 = math.exp %419 : vector<16x32xf32>
    %cst_97 = arith.constant 1.000000e+00 : f32
    %421 = vector.broadcast %cst_97 : f32 to vector<16x32xf32>
    %422 = arith.addf %421, %420 : vector<16x32xf32>
    %423 = arith.divf %421, %422 : vector<16x32xf32>
    %424 = vector.extract_strided_slice %410 {offsets = [0, 32], sizes = [16, 32], strides = [1, 1]} : vector<16x128xf32> to vector<16x32xf32>
    %425 = arith.negf %424 : vector<16x32xf32>
    %426 = math.exp %425 : vector<16x32xf32>
    %cst_98 = arith.constant 1.000000e+00 : f32
    %427 = vector.broadcast %cst_98 : f32 to vector<16x32xf32>
    %428 = arith.addf %427, %426 : vector<16x32xf32>
    %429 = arith.divf %427, %428 : vector<16x32xf32>
    %430 = vector.extract_strided_slice %410 {offsets = [0, 64], sizes = [16, 32], strides = [1, 1]} : vector<16x128xf32> to vector<16x32xf32>
    %431 = math.tanh %430 : vector<16x32xf32>
    %432 = vector.extract_strided_slice %410 {offsets = [0, 96], sizes = [16, 32], strides = [1, 1]} : vector<16x128xf32> to vector<16x32xf32>
    %433 = arith.negf %432 : vector<16x32xf32>
    %434 = math.exp %433 : vector<16x32xf32>
    %cst_99 = arith.constant 1.000000e+00 : f32
    %435 = vector.broadcast %cst_99 : f32 to vector<16x32xf32>
    %436 = arith.addf %435, %434 : vector<16x32xf32>
    %437 = arith.divf %435, %436 : vector<16x32xf32>
    %438 = arith.mulf %429, %375 : vector<16x32xf32>
    %439 = arith.mulf %423, %431 : vector<16x32xf32>
    %440 = arith.addf %438, %439 : vector<16x32xf32>
    %441 = math.tanh %440 : vector<16x32xf32>
    %442 = arith.mulf %437, %441 : vector<16x32xf32>
    %443 = vector.extract_strided_slice %417 {offsets = [0, 0], sizes = [16, 32], strides = [1, 1]} : vector<16x128xf32> to vector<16x32xf32>
    %444 = arith.negf %443 : vector<16x32xf32>
    %445 = math.exp %444 : vector<16x32xf32>
    %cst_100 = arith.constant 1.000000e+00 : f32
    %446 = vector.broadcast %cst_100 : f32 to vector<16x32xf32>
    %447 = arith.addf %446, %445 : vector<16x32xf32>
    %448 = arith.divf %446, %447 : vector<16x32xf32>
    %449 = vector.extract_strided_slice %417 {offsets = [0, 32], sizes = [16, 32], strides = [1, 1]} : vector<16x128xf32> to vector<16x32xf32>
    %450 = arith.negf %449 : vector<16x32xf32>
    %451 = math.exp %450 : vector<16x32xf32>
    %cst_101 = arith.constant 1.000000e+00 : f32
    %452 = vector.broadcast %cst_101 : f32 to vector<16x32xf32>
    %453 = arith.addf %452, %451 : vector<16x32xf32>
    %454 = arith.divf %452, %453 : vector<16x32xf32>
    %455 = vector.extract_strided_slice %417 {offsets = [0, 64], sizes = [16, 32], strides = [1, 1]} : vector<16x128xf32> to vector<16x32xf32>
    %456 = math.tanh %455 : vector<16x32xf32>
    %457 = vector.extract_strided_slice %417 {offsets = [0, 96], sizes = [16, 32], strides = [1, 1]} : vector<16x128xf32> to vector<16x32xf32>
    %458 = arith.negf %457 : vector<16x32xf32>
    %459 = math.exp %458 : vector<16x32xf32>
    %cst_102 = arith.constant 1.000000e+00 : f32
    %460 = vector.broadcast %cst_102 : f32 to vector<16x32xf32>
    %461 = arith.addf %460, %459 : vector<16x32xf32>
    %462 = arith.divf %460, %461 : vector<16x32xf32>
    %463 = arith.mulf %454, %400 : vector<16x32xf32>
    %464 = arith.mulf %448, %456 : vector<16x32xf32>
    %465 = arith.addf %463, %464 : vector<16x32xf32>
    %466 = math.tanh %465 : vector<16x32xf32>
    %467 = arith.mulf %462, %466 : vector<16x32xf32>
    %c7_i32_103 = arith.constant 7 : i32
    %c7_i32_104 = arith.constant 7 : i32
    %468 = arith.subi %c7_i32_104, %c7_i32_103 : i32
    %469 = arith.index_cast %c7_i32_103 : i32 to index
    %c0_105 = arith.constant 0 : index
    %c0_106 = arith.constant 0 : index
    %470 = vector.load %arg7[%469, %c0_105, %c0_106] : memref<8x16x256xbf16, #tpu.memory_space<vmem>>, vector<1x16x128xbf16>
    %471 = vector.shape_cast %470 : vector<1x16x128xbf16> to vector<16x128xbf16>
    %472 = arith.truncf %442 : vector<16x32xf32> to vector<16x32xbf16>
    %cst_107 = arith.constant dense<0.000000e+00> : vector<16x128xf32>
    %473 = tpu.matmul %472, %2, %cst_107 {dimension_numbers = #tpu.dot_dimension_numbers<[1], [0], [0], [1], [0, 0, 1, 1], [], []>} : vector<16x32xbf16>, vector<32x128xbf16>, vector<16x128xf32> -> vector<16x128xf32>
    %474 = arith.extf %471 : vector<16x128xbf16> to vector<16x128xf32>
    %475 = arith.addf %474, %473 : vector<16x128xf32>
    %476 = arith.index_cast %468 : i32 to index
    %c0_108 = arith.constant 0 : index
    %c128_109 = arith.constant 128 : index
    %477 = vector.load %arg7[%476, %c0_108, %c128_109] : memref<8x16x256xbf16, #tpu.memory_space<vmem>>, vector<1x16x128xbf16>
    %478 = vector.shape_cast %477 : vector<1x16x128xbf16> to vector<16x128xbf16>
    %479 = arith.truncf %467 : vector<16x32xf32> to vector<16x32xbf16>
    %cst_110 = arith.constant dense<0.000000e+00> : vector<16x128xf32>
    %480 = tpu.matmul %479, %3, %cst_110 {dimension_numbers = #tpu.dot_dimension_numbers<[1], [0], [0], [1], [0, 0, 1, 1], [], []>} : vector<16x32xbf16>, vector<32x128xbf16>, vector<16x128xf32> -> vector<16x128xf32>
    %481 = arith.extf %478 : vector<16x128xbf16> to vector<16x128xf32>
    %482 = arith.addf %481, %480 : vector<16x128xf32>
    %483 = vector.extract_strided_slice %475 {offsets = [0, 0], sizes = [16, 32], strides = [1, 1]} : vector<16x128xf32> to vector<16x32xf32>
    %484 = arith.negf %483 : vector<16x32xf32>
    %485 = math.exp %484 : vector<16x32xf32>
    %cst_111 = arith.constant 1.000000e+00 : f32
    %486 = vector.broadcast %cst_111 : f32 to vector<16x32xf32>
    %487 = arith.addf %486, %485 : vector<16x32xf32>
    %488 = arith.divf %486, %487 : vector<16x32xf32>
    %489 = vector.extract_strided_slice %475 {offsets = [0, 32], sizes = [16, 32], strides = [1, 1]} : vector<16x128xf32> to vector<16x32xf32>
    %490 = arith.negf %489 : vector<16x32xf32>
    %491 = math.exp %490 : vector<16x32xf32>
    %cst_112 = arith.constant 1.000000e+00 : f32
    %492 = vector.broadcast %cst_112 : f32 to vector<16x32xf32>
    %493 = arith.addf %492, %491 : vector<16x32xf32>
    %494 = arith.divf %492, %493 : vector<16x32xf32>
    %495 = vector.extract_strided_slice %475 {offsets = [0, 64], sizes = [16, 32], strides = [1, 1]} : vector<16x128xf32> to vector<16x32xf32>
    %496 = math.tanh %495 : vector<16x32xf32>
    %497 = vector.extract_strided_slice %475 {offsets = [0, 96], sizes = [16, 32], strides = [1, 1]} : vector<16x128xf32> to vector<16x32xf32>
    %498 = arith.negf %497 : vector<16x32xf32>
    %499 = math.exp %498 : vector<16x32xf32>
    %cst_113 = arith.constant 1.000000e+00 : f32
    %500 = vector.broadcast %cst_113 : f32 to vector<16x32xf32>
    %501 = arith.addf %500, %499 : vector<16x32xf32>
    %502 = arith.divf %500, %501 : vector<16x32xf32>
    %503 = arith.mulf %494, %440 : vector<16x32xf32>
    %504 = arith.mulf %488, %496 : vector<16x32xf32>
    %505 = arith.addf %503, %504 : vector<16x32xf32>
    %506 = math.tanh %505 : vector<16x32xf32>
    %507 = arith.mulf %502, %506 : vector<16x32xf32>
    %508 = vector.extract_strided_slice %482 {offsets = [0, 0], sizes = [16, 32], strides = [1, 1]} : vector<16x128xf32> to vector<16x32xf32>
    %509 = arith.negf %508 : vector<16x32xf32>
    %510 = math.exp %509 : vector<16x32xf32>
    %cst_114 = arith.constant 1.000000e+00 : f32
    %511 = vector.broadcast %cst_114 : f32 to vector<16x32xf32>
    %512 = arith.addf %511, %510 : vector<16x32xf32>
    %513 = arith.divf %511, %512 : vector<16x32xf32>
    %514 = vector.extract_strided_slice %482 {offsets = [0, 32], sizes = [16, 32], strides = [1, 1]} : vector<16x128xf32> to vector<16x32xf32>
    %515 = arith.negf %514 : vector<16x32xf32>
    %516 = math.exp %515 : vector<16x32xf32>
    %cst_115 = arith.constant 1.000000e+00 : f32
    %517 = vector.broadcast %cst_115 : f32 to vector<16x32xf32>
    %518 = arith.addf %517, %516 : vector<16x32xf32>
    %519 = arith.divf %517, %518 : vector<16x32xf32>
    %520 = vector.extract_strided_slice %482 {offsets = [0, 64], sizes = [16, 32], strides = [1, 1]} : vector<16x128xf32> to vector<16x32xf32>
    %521 = math.tanh %520 : vector<16x32xf32>
    %522 = vector.extract_strided_slice %482 {offsets = [0, 96], sizes = [16, 32], strides = [1, 1]} : vector<16x128xf32> to vector<16x32xf32>
    %523 = arith.negf %522 : vector<16x32xf32>
    %524 = math.exp %523 : vector<16x32xf32>
    %cst_116 = arith.constant 1.000000e+00 : f32
    %525 = vector.broadcast %cst_116 : f32 to vector<16x32xf32>
    %526 = arith.addf %525, %524 : vector<16x32xf32>
    %527 = arith.divf %525, %526 : vector<16x32xf32>
    %528 = arith.mulf %519, %465 : vector<16x32xf32>
    %529 = arith.mulf %513, %521 : vector<16x32xf32>
    %530 = arith.addf %528, %529 : vector<16x32xf32>
    %531 = math.tanh %530 : vector<16x32xf32>
    %532 = arith.mulf %527, %531 : vector<16x32xf32>
    %c8_i32 = arith.constant 8 : i32
    %c0_117 = arith.constant 0 : index
    %c0_118 = arith.constant 0 : index
    %533 = vector.load %arg6[%c0_117, %c0_118] : memref<16x64xf32, #tpu.memory_space<vmem>>, vector<16x32xf32>
    tpu.vector_store %arg6[%c0_117, %c0_118], %507 {strides = array<i32>} : memref<16x64xf32, #tpu.memory_space<vmem>>, vector<16x32xf32>,
    %c0_119 = arith.constant 0 : index
    %c32 = arith.constant 32 : index
    %534 = vector.load %arg6[%c0_119, %c32] : memref<16x64xf32, #tpu.memory_space<vmem>>, vector<16x32xf32>
    tpu.vector_store %arg6[%c0_119, %c32], %532 {strides = array<i32>} : memref<16x64xf32, #tpu.memory_space<vmem>>, vector<16x32xf32>,
    return
  }
  func.func @transform_0(%arg0: i32) -> (i32, i32, i32) {
    %c0_i32 = arith.constant 0 : i32
    %c0_i32_0 = arith.constant 0 : i32
    %c0_i32_1 = arith.constant 0 : i32
    return %c0_i32, %arg0, %c0_i32_0 : i32, i32, i32
  }
  func.func @transform_1(%arg0: i32) -> (i32, i32) {
    %c0_i32 = arith.constant 0 : i32
    %c0_i32_0 = arith.constant 0 : i32
    %c0_i32_1 = arith.constant 0 : i32
    return %c0_i32, %c0_i32_0 : i32, i32
  }
  func.func @transform_2(%arg0: i32) -> (i32, i32) {
    %c0_i32 = arith.constant 0 : i32
    %c0_i32_0 = arith.constant 0 : i32
    %c0_i32_1 = arith.constant 0 : i32
    return %c0_i32, %c0_i32_0 : i32, i32
  }
  func.func @transform_3(%arg0: i32) -> (i32, i32) {
    %c0_i32 = arith.constant 0 : i32
    %c0_i32_0 = arith.constant 0 : i32
    %c0_i32_1 = arith.constant 0 : i32
    return %c0_i32, %c0_i32_0 : i32, i32
  }
  func.func @transform_4(%arg0: i32) -> (i32, i32) {
    %c0_i32 = arith.constant 0 : i32
    %c0_i32_0 = arith.constant 0 : i32
    %c0_i32_1 = arith.constant 0 : i32
    return %c0_i32, %c0_i32_0 : i32, i32
  }
  func.func @transform_5(%arg0: i32) -> (i32, i32) {
    %c0_i32 = arith.constant 0 : i32
    %c0_i32_0 = arith.constant 0 : i32
    return %arg0, %c0_i32 : i32, i32
  }
}

</mosaic_0001>

<bundles_post_ra>
// kernel: bilstm_forward.1
= control target key start
LH: loop header
LB: loop body
LE: loop exit
PB: predicated region body
PF: predicated region fallthrough
CT: control target
= control target key end

     0   :  { %v2593_v1 = vmov 0   ;;  %v2594_v2 = vmov 0.0   ;;  %vm2595_vm0 = vmmov 0   ;;  %vm109_vm1 = vcmask 130048   ;;  %s3129_s1 = inlined_call_operand.vmem [shape: bf16[16,256], index: 1, kind: input, shape index: {}]   ;;  %s3130_s0 = inlined_call_operand.vmem [shape: bf16[8,16,16], index: 0, kind: input, shape index: {}]   ;;  %s3131_s3 = inlined_call_operand.vmem [shape: bf16[32,128], index: 3, kind: input, shape index: {}]   ;;  %s3132_s4 = inlined_call_operand.vmem [shape: bf16[32,128], index: 4, kind: input, shape index: {}]   ;;  %s3133_s2 = inlined_call_operand.vmem [shape: f32[1,256], index: 2, kind: input, shape index: {}]   ;;  %s3134_s5 = inlined_call_operand.vmem [shape: f32[16,64], index: 5, kind: output, shape index: {}]  }
   0x1   :  { %v2318_v0 = vld [vmem:[%s3129_s1 + $0x4] ss:$8 sps:$4 sm:$0xff]   ;;  %166 = vmatprep.mubr.bf16.mxu0 %v2593_v1  ;;  %2185 = vmatprep.subr.bf16.mxu1 %v2594_v2  ;;  %v2320_v3 = vld [vmem:[%s3129_s1] ss:$8 sps:$4 sm:$0xff]   ;;  %v2325_v10 = vld [vmem:[%s3130_s0 + $0x10] sm:$0xff]   ;;  %v49_v16 = vlaneseq  ;;  %vm373_vm2 = vcmask 261120  }
   0x2   :  { %2189 = vmatprep.mubr.msk.bf16.mxu1 %vm2595_vm0, %v2594_v2  ;;  %148 = vmatprep.subr.bf16.mxu0 %v2318_v0  ;;  %v2321_v4 = vld [vmem:[%s3130_s0] sm:$0xff]   ;;  %v2643_v5 = vld [vmem:[%s3131_s3 + $0x8] sm:$0xff]   ;;  %v2326_v11 = vld [vmem:[%s3130_s0 + $0x18] sm:$0xff]   ;;  %vm2030_vm3 = vcmask 523520  }
   0x3   :  { %149 = vmatpush1.bf16.msra.mxu0 %v2320_v3  ;;  %2186 = vmatpush3.bf16.msra.mxu1 %v2643_v5  ;;  %v2651_v6 = vld [vmem:[%s3131_s3] sm:$0xff]   ;;  %v2322_v7 = vld [vmem:[%s3130_s0 + $0x8] sm:$0xff]   ;;  %v2329_v14 = vld [vmem:[%s3130_s0 + $0x30] sm:$0xff]   ;;  %v50_v17 = vshrl.u32 %v49_v16, 7 }
   0x4   :  { %2249 = vmatprep.subr.bf16.mxu0 %v2594_v2  ;;  %2187 = vmatprep.subr.bf16.mxu1 %v2594_v2  ;;  %v2664_v8 = vld [vmem:[%s3132_s4 + $0x8] sm:$0xff]   ;;  %v2673_v9 = vld [vmem:[%s3132_s4] sm:$0xff]   ;;  %v2330_v15 = vld [vmem:[%s3130_s0 + $0x38] sm:$0xff]  }
   0x5   :  { %v2327_v12 = vld [vmem:[%s3130_s0 + $0x20] sm:$0xff]   ;;  %v2328_v13 = vld [vmem:[%s3130_s0 + $0x28] sm:$0xff]   ;;  %v51_v18 = vsub.s32 0, %v50_v17  ;;  %v55_v19 = vsub.s32 1, %v50_v17  ;;  %s2596_s0 = smov 64  }
   0x6   :  { %2047 = vmatmul.mubr.msk.bf16.vlgmr.msra.gmra.mxu0 %vm109_vm1, %v2321_v4  ;;  %v23_v20 = vld [vmem:[%s3133_s2] sm:$0x3]  ;;  %s2597_s2 = smov 32  }
   0x7   :  { %176 = vmatprep.mubr.bf16.mxu0 %v2593_v1  ;;  %2250 = vmatpush3.bf16.msra.mxu0 %v2643_v5  ;;  %v2715_v21 = vrot.slane %v23_v20, %v51_v18  ;;  %v2717_v22 = vrot.slane %v23_v20, %v55_v19 }
   0x8   :  { %2251 = vmatprep.subr.bf16.mxu0 %v2594_v2  ;;  %2188 = vmatpush3.bf16.msra.mxu1 %v2651_v6 }
   0x9   :  { %2193 = vmatprep.subr.bf16.mxu1 %v2594_v2 }
   0xb   :  { %2252 = vmatpush3.bf16.msra.mxu0 %v2651_v6  ;;  %2190 = vmatmul.mubr.bf16.vlgmr.msra.gmra.mxu1 %v2593_v1 }
   0xc   :  { %2265 = vmatprep.subr.bf16.mxu0 %v2594_v2  ;;  %2194 = vmatpush3.bf16.msra.mxu1 %v2664_v8 }
   0xd   :  { %2195 = vmatprep.subr.bf16.mxu1 %v2594_v2  ;;  %2197 = vmatprep.mubr.msk.bf16.mxu1 %vm2595_vm0, %v2594_v2 }
   0xe   :  { %2048 = vmatmul.mubr.msk.bf16.gmra.mxu0 %vm109_vm1, %v2322_v7 }
   0xf   :  { %186 = vmatprep.mubr.bf16.mxu0 %v2593_v1 }
  0x10   :  { %2196 = vmatpush3.bf16.msra.mxu1 %v2673_v9 }
  0x11   :  { %2201 = vmatprep.subr.bf16.mxu1 %v2594_v2 }
  0x13   :  { %2198 = vmatmul.mubr.bf16.vlgmr.msra.gmra.mxu1 %v2593_v1 }
  0x14   :  { %2202 = vmatpush3.bf16.msra.mxu1 %v2643_v5  ;;  %2205 = vmatprep.mubr.msk.bf16.mxu1 %vm2595_vm0, %v2594_v2 }
  0x15   :  { %2203 = vmatprep.subr.bf16.mxu1 %v2594_v2 }
  0x16   :  { %2049 = vmatmul.mubr.msk.bf16.gmra.mxu0 %vm109_vm1, %v2325_v10 }
  0x17   :  { %196 = vmatprep.mubr.bf16.mxu0 %v2593_v1 }
  0x18   :  { %2204 = vmatpush3.bf16.msra.mxu1 %v2651_v6 }
  0x19   :  { %2209 = vmatprep.subr.bf16.mxu1 %v2594_v2 }
  0x1e   :  { %2050 = vmatmul.mubr.msk.bf16.gmra.mxu0 %vm109_vm1, %v2326_v11 }
  0x1f   :  { %206 = vmatprep.mubr.bf16.mxu0 %v2593_v1 }
  0x26   :  { %2051 = vmatmul.mubr.msk.bf16.gmra.mxu0 %vm109_vm1, %v2327_v12 }
  0x27   :  { %216 = vmatprep.mubr.bf16.mxu0 %v2593_v1 }
  0x2e   :  { %2052 = vmatmul.mubr.msk.bf16.gmra.mxu0 %vm109_vm1, %v2328_v13 }
  0x2f   :  { %226 = vmatprep.mubr.bf16.mxu0 %v2593_v1 }
  0x36   :  { %2053 = vmatmul.mubr.msk.bf16.gmra.mxu0 %vm109_vm1, %v2329_v14 }
  0x37   :  { %236 = vmatprep.mubr.bf16.mxu0 %v2593_v1 }
  0x3e   :  { %2054 = vmatmul.mubr.msk.bf16.gmra.mxu0 %vm109_vm1, %v2330_v15 }
  0x3f   :  { %2253 = vmatprep.mubr.msk.bf16.mxu0 %vm2595_vm0, %v2594_v2 }
  0xc6   :  { %v168_v23 = vpop.f32.mrf.mxu0 }
  0xc7   :  { %v169_v25 = vadd.f32 %v168_v23, %v2715_v21 }
  0xc8   :  { %v170_v24 = vpop.f32.mrf.mxu0 }
  0xc9   :  { %v171_v26 = vadd.f32 %v170_v24, %v2717_v22 }
  0xca   :  { %v172_v27 = vpop.f32.mrf.mxu0 }
  0xcb   :  { %v2121_v28 = vpack.c.bf16 %v171_v26, %v169_v25  ;;  %v173_v30 = vadd.f32 %v172_v27, %v2715_v21  ;;  %v411_v32 = vpop.f32.mrf.mxu1 }
  0xcc   :  { %v174_v29 = vpop.f32.mrf.mxu0 }
  0xcd   :  { %343 = vst [vmem:[#allocation2] sm:$0xff] %v2121_v28  ;;  %v175_v31 = vadd.f32 %v174_v29, %v2717_v22  ;;  %v2191_v35 = vpop.f32.mrf.mxu1 }
  0xce   :  { %v178_v33 = vpop.f32.mrf.mxu0 }
  0xcf   :  { %v2122_v34 = vpack.c.bf16 %v175_v31, %v173_v30  ;;  %v179_v37 = vadd.f32 %v178_v33, %v2715_v21  ;;  %v414_v39 = vpop.f32.mrf.mxu1 }
  0xd0   :  { %v180_v36 = vpop.f32.mrf.mxu0 }
  0xd1   :  { %344 = vst [vmem:[#allocation2 + $0x8] sm:$0xff] %v2122_v34  ;;  %v181_v38 = vadd.f32 %v180_v36, %v2717_v22  ;;  %v2192_v42 = vpop.f32.mrf.mxu1 }
  0xd2   :  { %v182_v40 = vpop.f32.mrf.mxu0 }
  0xd3   :  { %v2123_v41 = vpack.c.bf16 %v181_v38, %v179_v37  ;;  %v183_v44 = vadd.f32 %v182_v40, %v2715_v21  ;;  %v2727_v46 = vpop.f32.mrf.mxu1 }
  0xd4   :  { %v184_v43 = vpop.f32.mrf.mxu0 }
  0xd5   :  { %345 = vst [vmem:[#allocation2 + $0x10] sm:$0xff] %v2123_v41  ;;  %v185_v45 = vadd.f32 %v184_v43, %v2717_v22  ;;  %v2199_v49 = vpop.f32.mrf.mxu1 }
  0xd6   :  { %v188_v47 = vpop.f32.mrf.mxu0 }
  0xd7   :  { %v2124_v48 = vpack.c.bf16 %v185_v45, %v183_v44  ;;  %v189_v52 = vadd.f32 %v188_v47, %v2715_v21  ;;  %v2731_v56 = vpop.f32.mrf.mxu1 }
  0xd8   :  { %v359_v50 = vld [vmem:[#allocation2] ss:$8 sps:$4 sm:$0xff]   ;;  %v190_v51 = vpop.f32.mrf.mxu0 }
  0xd9   :  { %346 = vst [vmem:[#allocation2 + $0x18] sm:$0xff] %v2124_v48  ;;  %v418_v53 = vunpack.c.l.bf16 %v359_v50  ;;  %v191_v54 = vadd.f32 %v190_v51, %v2717_v22  ;;  %v419_v55 = vunpack.c.h.bf16 %v359_v50  ;;  %v2200_v60 = vpop.f32.mrf.mxu1 }
  0xda   :  { %v192_v57 = vpop.f32.mrf.mxu0 }
  0xdb   :  { %v2733_v58 = vadd.f32 %v418_v53, %v411_v32  ;;  %v2125_v59 = vpack.c.bf16 %v191_v54, %v189_v52  ;;  %v193_v62 = vadd.f32 %v192_v57, %v2715_v21  ;;  %v2737_v63 = vadd.f32 %v419_v55, %v414_v39 }
  0xdc   :  { %v194_v61 = vpop.f32.mrf.mxu0 }
  0xdd   :  { %2333 = vtanh.f32 %v2733_v58  ;;  %347 = vst [vmem:[#allocation2 + $0x20] sm:$0xff] %v2125_v59  ;;  %v195_v0 = vadd.f32 %v194_v61, %v2717_v22 }
  0xde   :  { %v198_v1 = vpop.f32.mrf.mxu0  ;;  %2335 = vtanh.f32 %v2737_v63 }
  0xdf   :  { %v2126_v3 = vpack.c.bf16 %v195_v0, %v193_v62  ;;  %v199_v7 = vadd.f32 %v198_v1, %v2715_v21 }
  0xe0   :  { %v200_v4 = vpop.f32.mrf.mxu0 }
  0xe1   :  { %348 = vst [vmem:[#allocation2 + $0x28] sm:$0xff] %v2126_v3  ;;  %v201_v10 = vadd.f32 %v200_v4, %v2717_v22 }
  0xe2   :  { %v202_v11 = vpop.f32.mrf.mxu0 }
  0xe3   :  { %v2127_v12 = vpack.c.bf16 %v201_v10, %v199_v7  ;;  %v203_v14 = vadd.f32 %v202_v11, %v2715_v21 }
  0xe4   :  { %v204_v13 = vpop.f32.mrf.mxu0 }
  0xe5   :  { %349 = vst [vmem:[#allocation2 + $0x30] sm:$0xff] %v2127_v12  ;;  %v205_v15 = vadd.f32 %v204_v13, %v2717_v22 }
  0xe6   :  { %v208_v16 = vpop.f32.mrf.mxu0 }
  0xe7   :  { %v2128_v17 = vpack.c.bf16 %v205_v15, %v203_v14  ;;  %v209_v19 = vadd.f32 %v208_v16, %v2715_v21 }
  0xe8   :  { %v210_v18 = vpop.f32.mrf.mxu0 }
  0xe9   :  { %350 = vst [vmem:[#allocation2 + $0x38] sm:$0xff] %v2128_v17  ;;  %v211_v20 = vadd.f32 %v210_v18, %v2717_v22 }
  0xea   :  { %v2334_v23 = vpop.eup %2333  ;;  %v212_v24 = vpop.f32.mrf.mxu0 }
  0xeb   :  { %500 = vrot.lane.b32.xlu0 %v2334_v23, %s2596_s0  ;;  %v2129_v25 = vpack.c.bf16 %v211_v20, %v209_v19  ;;  %v213_v27 = vadd.f32 %v212_v24, %v2715_v21  ;;  %v2336_v29 = vpop.eup %2335 }
  0xec   :  { %v214_v26 = vpop.f32.mrf.mxu0 }
  0xed   :  { %351 = vst [vmem:[#allocation2 + $0x40] sm:$0xff] %v2129_v25  ;;  %v215_v28 = vadd.f32 %v214_v26, %v2717_v22 }
  0xee   :  { %v218_v30 = vpop.f32.mrf.mxu0 }
  0xef   :  { %502 = vrot.lane.b32.xlu0 %v2336_v29, %s2596_s0  ;;  %v2130_v31 = vpack.c.bf16 %v215_v28, %v213_v27  ;;  %v219_v33 = vadd.f32 %v218_v30, %v2715_v21 }
  0xf0   :  { %v220_v32 = vpop.f32.mrf.mxu0 }
  0xf1   :  { %352 = vst [vmem:[#allocation2 + $0x48] sm:$0xff] %v2130_v31  ;;  %v221_v34 = vadd.f32 %v220_v32, %v2717_v22 }
  0xf2   :  { %v222_v35 = vpop.f32.mrf.mxu0 }
  0xf3   :  { %v2131_v36 = vpack.c.bf16 %v221_v34, %v219_v33  ;;  %v223_v38 = vadd.f32 %v222_v35, %v2715_v21 }
  0xf4   :  { %v224_v37 = vpop.f32.mrf.mxu0 }
  0xf5   :  { %353 = vst [vmem:[#allocation2 + $0x50] sm:$0xff] %v2131_v36  ;;  %v225_v39 = vadd.f32 %v224_v37, %v2717_v22 }
  0xf6   :  { %v228_v40 = vpop.f32.mrf.mxu0 }
  0xf7   :  { %v2132_v41 = vpack.c.bf16 %v225_v39, %v223_v38  ;;  %v229_v43 = vadd.f32 %v228_v40, %v2715_v21 }
  0xf8   :  { %v230_v42 = vpop.f32.mrf.mxu0 }
  0xf9   :  { %354 = vst [vmem:[#allocation2 + $0x58] sm:$0xff] %v2132_v41  ;;  %v231_v44 = vadd.f32 %v230_v42, %v2717_v22 }
  0xfa   :  { %v232_v45 = vpop.f32.mrf.mxu0 }
  0xfb   :  { %v2133_v47 = vpack.c.bf16 %v231_v44, %v229_v43  ;;  %v233_v49 = vadd.f32 %v232_v45, %v2715_v21 }
  0xfc   :  { %v234_v48 = vpop.f32.mrf.mxu0 }
  0xfd   :  { %355 = vst [vmem:[#allocation2 + $0x60] sm:$0xff] %v2133_v47  ;;  %v235_v50 = vadd.f32 %v234_v48, %v2717_v22 }
  0xfe   :  { %v238_v51 = vpop.f32.mrf.mxu0 }
  0xff   :  { %v2134_v52 = vpack.c.bf16 %v235_v50, %v233_v49  ;;  %v239_v54 = vadd.f32 %v238_v51, %v2715_v21 }
 0x100   :  { %v240_v53 = vpop.f32.mrf.mxu0 }
 0x101   :  { %356 = vst [vmem:[#allocation2 + $0x68] sm:$0xff] %v2134_v52  ;;  %v241_v55 = vadd.f32 %v240_v53, %v2717_v22 }
 0x102   :  { %v242_v57 = vpop.f32.mrf.mxu0 }
 0x103   :  { %v2135_v59 = vpack.c.bf16 %v241_v55, %v239_v54  ;;  %v243_v61 = vadd.f32 %v242_v57, %v2715_v21  ;;  %v2075_v21 = vmul.f32 -1.442695, %v2733_v58 }
 0x104   :  { %v244_v60 = vpop.f32.mrf.mxu0 }
 0x105   :  { %357 = vst [vmem:[#allocation2 + $0x70] sm:$0xff] %v2135_v59  ;;  %v245_v62 = vadd.f32 %v244_v60, %v2717_v22  ;;  %v2076_v22 = vmul.f32 -1.442695, %v2737_v63 }
 0x107   :  { %v2136_v0 = vpack.c.bf16 %v245_v62, %v243_v61 }
 0x109   :  { %358 = vst [vmem:[#allocation2 + $0x78] sm:$0xff] %v2136_v0 }
 0x110   :  { %v423_v1 = vld [vmem:[#allocation2 + $0x74] ss:$8 sps:$4 sm:$0xff]  }
 0x111   :  { %v478_v3 = vunpack.c.l.bf16 %v423_v1  ;;  %v479_v4 = vunpack.c.h.bf16 %v423_v1  ;;  %v579_v1 = vld [vmem:[#allocation2 + $0x10] ss:$8 sps:$4 sm:$0xff]  }
 0x113   :  { %v480_v7 = vadd.f32 %v478_v3, %v2727_v46  ;;  %v481_v10 = vadd.f32 %v479_v4, %v2731_v56  ;;  %v629_v3 = vunpack.c.l.bf16 %v579_v1 }
 0x115   :  { %2337 = vtanh.f32 %v480_v7  ;;  %v2077_v58 = vmul.f32 -1.442695, %v480_v7  ;;  %v2078_v63 = vmul.f32 -1.442695, %v481_v10 }
 0x116   :  { %2339 = vtanh.f32 %v481_v10 }
 0x117   :  { %2341 = vpow2.f32 %v2075_v21 }
 0x118   :  { %2343 = vpow2.f32 %v2076_v22 }
 0x122   :  { %v2338_v11 = vpop.eup %2337 }
 0x123   :  { %548 = vrot.lane.b32.xlu1 %v2338_v11, %s2596_s0  ;;  %v2340_v12 = vpop.eup %2339  ;;  %v630_v11 = vunpack.c.h.bf16 %v579_v1 }
 0x124   :  { %v2342_v13 = vpop.eup %2341 }
 0x125   :  { %v488_v14 = vadd.f32 1.0, %v2342_v13  ;;  %v2344_v15 = vpop.eup %2343 }
 0x126   :  { %v489_v46 = vadd.f32 1.0, %v2344_v15  ;;  %v634_v15 = vld [vmem:[#allocation2 + $0x64] ss:$8 sps:$4 sm:$0xff]  }
 0x127   :  { %550 = vrot.lane.b32.xlu1 %v2340_v12, %s2596_s0  ;;  %2345 = vrcp.f32 %v488_v14 }
 0x128   :  { %2347 = vrcp.f32 %v489_v46  ;;  %v684_v46 = vunpack.c.l.bf16 %v634_v15 }
 0x129   :  { %2349 = vpow2.f32 %v2077_v58 }
 0x12a   :  { %2351 = vpow2.f32 %v2078_v63 }
 0x134   :  { %v2346_v56 = vpop.eup %2345 }
 0x135   :  { %v2348_v18 = vpop.eup %2347  ;;  %v496_v33 = vmul.f32 0.0, %v2346_v56 }
 0x136   :  { %v2350_v23 = vpop.eup %2349  ;;  %v497_v36 = vmul.f32 0.0, %v2348_v18 }
 0x137   :  { %v536_v24 = vadd.f32 1.0, %v2350_v23  ;;  %v2352_v25 = vpop.eup %2351 }
 0x138   :  { %v537_v26 = vadd.f32 1.0, %v2352_v25 }
 0x139   :  { %2353 = vrcp.f32 %v536_v24 }
 0x13a   :  { %2355 = vrcp.f32 %v537_v26 }
 0x146   :  { %v2354_v27 = vpop.eup %2353 }
 0x147   :  { %v2356_v30 = vpop.eup %2355  ;;  %v544_v41 = vmul.f32 0.0, %v2354_v27 }
 0x148   :  { %v545_v44 = vmul.f32 0.0, %v2356_v30 }
 0x15d   :  { %v501_v16 = vpop.permute.xlu0 %500 }
 0x15e   :  { %v506_v17 = vmul.f32 %v2346_v56, %v501_v16 }
 0x160   :  { %510 = vrot.lane.b32.xlu0 %v506_v17, %s2597_s2 }
 0x161   :  { %v503_v19 = vpop.permute.xlu0 %502 }
 0x162   :  { %v507_v20 = vmul.f32 %v2348_v18, %v503_v19 }
 0x164   :  { %512 = vrot.lane.b32.xlu1 %v507_v20, %s2597_s2 }
 0x195   :  { %v549_v28 = vpop.permute.xlu1 %548 }
 0x196   :  { %v554_v29 = vmul.f32 %v2354_v27, %v549_v28 }
 0x198   :  { %558 = vrot.lane.b32.xlu0 %v554_v29, %s2597_s2 }
 0x199   :  { %v551_v31 = vpop.permute.xlu1 %550 }
 0x19a   :  { %v555_v32 = vmul.f32 %v2356_v30, %v551_v31 }
 0x19c   :  { %560 = vrot.lane.b32.xlu1 %v555_v32, %s2597_s2 }
 0x1d2   :  { %v511_v34 = vpop.permute.xlu0 %510 }
 0x1d3   :  { %v2773_v35 = vadd.f32 %v511_v34, %v496_v33 }
 0x1d5   :  { %2357 = vtanh.f32 %v2773_v35 }
 0x1d6   :  { %v513_v37 = vpop.permute.xlu1 %512 }
 0x1d7   :  { %v2776_v38 = vadd.f32 %v513_v37, %v497_v36 }
 0x1d9   :  { %2359 = vtanh.f32 %v2776_v38 }
 0x1e2   :  { %v2358_v39 = vpop.eup %2357 }
 0x1e3   :  { %522 = vrot.lane.b32.xlu0 %v2358_v39, %s2596_s0 }
 0x1e6   :  { %v2360_v40 = vpop.eup %2359 }
 0x1e7   :  { %524 = vrot.lane.b32.xlu1 %v2360_v40, %s2596_s0 }
 0x20a   :  { %v559_v42 = vpop.permute.xlu0 %558 }
 0x20b   :  { %v2781_v43 = vadd.f32 %v559_v42, %v544_v41 }
 0x20d   :  { %2361 = vtanh.f32 %v2781_v43 }
 0x20e   :  { %v561_v45 = vpop.permute.xlu1 %560 }
 0x20f   :  { %v2784_v47 = vadd.f32 %v561_v45, %v545_v44 }
 0x211   :  { %2363 = vtanh.f32 %v2784_v47 }
 0x21a   :  { %v2362_v48 = vpop.eup %2361 }
 0x21b   :  { %570 = vrot.lane.b32.xlu0 %v2362_v48, %s2596_s0 }
 0x21e   :  { %v2364_v49 = vpop.eup %2363 }
 0x21f   :  { %572 = vrot.lane.b32.xlu1 %v2364_v49, %s2596_s0 }
 0x255   :  { %v523_v50 = vpop.permute.xlu0 %522 }
 0x256   :  { %v528_v52 = vmul.f32 %v2346_v56, %v523_v50 }
 0x259   :  { %v525_v51 = vpop.permute.xlu1 %524 }
 0x25a   :  { %v529_v53 = vmul.f32 %v2348_v18, %v525_v51  ;;  %v685_v18 = vunpack.c.h.bf16 %v634_v15 }
 0x25c   :  { %v581_v54 = vpack.c.bf16 %v529_v53, %v528_v52 }
 0x25e   :  { %583 = vrot.lane.b32.xlu0 %v581_v54, %s2597_s2 }
 0x28d   :  { %v571_v55 = vpop.permute.xlu0 %570 }
 0x28e   :  { %v576_v59 = vmul.f32 %v2354_v27, %v571_v55 }
 0x291   :  { %v573_v57 = vpop.permute.xlu1 %572 }
 0x292   :  { %v577_v60 = vmul.f32 %v2356_v30, %v573_v57 }
 0x294   :  { %v636_v61 = vpack.c.bf16 %v577_v60, %v576_v59 }
 0x296   :  { %638 = vrot.lane.b32.xlu1 %v636_v61, %s2597_s2 }
 0x2d0   :  { %v584_v62 = vpop.permute.xlu0 %583 }
 0x2d1   :  { %2206 = vmatmul.mubr.msk.bf16.vlgmr.msra.gmra.mxu1 %vm373_vm2, %v584_v62 }
 0x2d2   :  { %2210 = vmatpush3.bf16.msra.mxu1 %v2664_v8  ;;  %2213 = vmatprep.mubr.msk.bf16.mxu1 %vm2595_vm0, %v2594_v2 }
 0x2d3   :  { %2211 = vmatprep.subr.bf16.mxu1 %v2594_v2 }
 0x2d6   :  { %2212 = vmatpush3.bf16.msra.mxu1 %v2673_v9 }
 0x2d7   :  { %2217 = vmatprep.subr.bf16.mxu1 %v2594_v2 }
 0x308   :  { %v639_v0 = vpop.permute.xlu1 %638 }
 0x309   :  { %2214 = vmatmul.mubr.msk.bf16.vlgmr.msra.gmra.mxu1 %vm373_vm2, %v639_v0 }
 0x30a   :  { %2218 = vmatpush3.bf16.msra.mxu1 %v2643_v5  ;;  %2221 = vmatprep.mubr.msk.bf16.mxu1 %vm2595_vm0, %v2594_v2 }
 0x30b   :  { %2219 = vmatprep.subr.bf16.mxu1 %v2594_v2 }
 0x30e   :  { %2220 = vmatpush3.bf16.msra.mxu1 %v2651_v6 }
 0x30f   :  { %2225 = vmatprep.subr.bf16.mxu1 %v2594_v2 }
 0x391   :  { %v622_v4 = vpop.f32.mrf.mxu1 }
 0x392   :  { %v631_v7 = vadd.f32 %v629_v3, %v622_v4 }
 0x393   :  { %v2207_v10 = vpop.f32.mrf.mxu1 }
 0x394   :  { %2365 = vtanh.f32 %v631_v7  ;;  %v2081_v24 = vmul.f32 -1.442695, %v631_v7 }
 0x395   :  { %v625_v12 = vpop.f32.mrf.mxu1 }
 0x396   :  { %v632_v21 = vadd.f32 %v630_v11, %v625_v12 }
 0x397   :  { %v2208_v22 = vpop.f32.mrf.mxu1 }
 0x398   :  { %2367 = vtanh.f32 %v632_v21  ;;  %v2082_v25 = vmul.f32 -1.442695, %v632_v21 }
 0x3a1   :  { %v2366_v13 = vpop.eup %2365 }
 0x3a2   :  { %706 = vrot.lane.b32.xlu0 %v2366_v13, %s2596_s0 }
 0x3a5   :  { %v2368_v14 = vpop.eup %2367 }
 0x3a6   :  { %708 = vrot.lane.b32.xlu1 %v2368_v14, %s2596_s0 }
 0x3c9   :  { %v677_v56 = vpop.f32.mrf.mxu1 }
 0x3ca   :  { %v686_v16 = vadd.f32 %v684_v46, %v677_v56 }
 0x3cb   :  { %v2215_v17 = vpop.f32.mrf.mxu1 }
 0x3cc   :  { %2369 = vtanh.f32 %v686_v16  ;;  %v2083_v37 = vmul.f32 -1.442695, %v686_v16  ;;  %v785_v17 = vld [vmem:[#allocation2 + $0x20] ss:$8 sps:$4 sm:$0xff]  }
 0x3cd   :  { %v680_v19 = vpop.f32.mrf.mxu1 }
 0x3ce   :  { %v687_v20 = vadd.f32 %v685_v18, %v680_v19  ;;  %v835_v18 = vunpack.c.l.bf16 %v785_v17 }
 0x3cf   :  { %v2216_v58 = vpop.f32.mrf.mxu1 }
 0x3d0   :  { %2371 = vtanh.f32 %v687_v20  ;;  %v2084_v39 = vmul.f32 -1.442695, %v687_v20 }
 0x3d1   :  { %2373 = vpow2.f32 %v2081_v24 }
 0x3d2   :  { %2375 = vpow2.f32 %v2082_v25 }
 0x3d9   :  { %v2370_v63 = vpop.eup %2369 }
 0x3da   :  { %754 = vrot.lane.b32.xlu0 %v2370_v63, %s2596_s0  ;;  %v836_v63 = vunpack.c.h.bf16 %v785_v17 }
 0x3dd   :  { %v2372_v23 = vpop.eup %2371 }
 0x3de   :  { %756 = vrot.lane.b32.xlu1 %v2372_v23, %s2596_s0  ;;  %v2374_v26 = vpop.eup %2373 }
 0x3df   :  { %v694_v27 = vadd.f32 1.0, %v2374_v26  ;;  %v2376_v28 = vpop.eup %2375 }
 0x3e0   :  { %v695_v29 = vadd.f32 1.0, %v2376_v28 }
 0x3e1   :  { %2377 = vrcp.f32 %v694_v27 }
 0x3e2   :  { %2379 = vrcp.f32 %v695_v29 }
 0x3e3   :  { %2381 = vpow2.f32 %v2083_v37 }
 0x3e4   :  { %2383 = vpow2.f32 %v2084_v39 }
 0x3ee   :  { %v2378_v30 = vpop.eup %2377 }
 0x3ef   :  { %v2380_v33 = vpop.eup %2379  ;;  %v702_v53 = vmul.f32 %v2378_v30, %v2773_v35 }
 0x3f0   :  { %v2382_v40 = vpop.eup %2381  ;;  %v703_v57 = vmul.f32 %v2380_v33, %v2776_v38 }
 0x3f1   :  { %v742_v41 = vadd.f32 1.0, %v2382_v40  ;;  %v2384_v42 = vpop.eup %2383 }
 0x3f2   :  { %v743_v44 = vadd.f32 1.0, %v2384_v42 }
 0x3f3   :  { %2385 = vrcp.f32 %v742_v41 }
 0x3f4   :  { %2387 = vrcp.f32 %v743_v44 }
 0x400   :  { %v2386_v45 = vpop.eup %2385 }
 0x401   :  { %v2388_v50 = vpop.eup %2387  ;;  %v750_v35 = vmul.f32 %v2386_v45, %v2781_v43 }
 0x402   :  { %v751_v38 = vmul.f32 %v2388_v50, %v2784_v47 }
 0x414   :  { %v707_v31 = vpop.permute.xlu0 %706 }
 0x415   :  { %v712_v32 = vmul.f32 %v2378_v30, %v707_v31 }
 0x417   :  { %716 = vrot.lane.b32.xlu0 %v712_v32, %s2597_s2 }
 0x418   :  { %v709_v34 = vpop.permute.xlu1 %708 }
 0x419   :  { %v713_v36 = vmul.f32 %v2380_v33, %v709_v34 }
 0x41b   :  { %718 = vrot.lane.b32.xlu1 %v713_v36, %s2597_s2 }
 0x44c   :  { %v755_v48 = vpop.permute.xlu0 %754 }
 0x44d   :  { %v760_v49 = vmul.f32 %v2386_v45, %v755_v48 }
 0x44f   :  { %764 = vrot.lane.b32.xlu0 %v760_v49, %s2597_s2 }
 0x450   :  { %v757_v51 = vpop.permute.xlu1 %756 }
 0x451   :  { %v761_v52 = vmul.f32 %v2388_v50, %v757_v51 }
 0x453   :  { %766 = vrot.lane.b32.xlu1 %v761_v52, %s2597_s2 }
 0x489   :  { %v717_v54 = vpop.permute.xlu0 %716 }
 0x48a   :  { %v2814_v55 = vadd.f32 %v717_v54, %v702_v53 }
 0x48c   :  { %2389 = vtanh.f32 %v2814_v55 }
 0x48d   :  { %v719_v59 = vpop.permute.xlu1 %718 }
 0x48e   :  { %v2818_v60 = vadd.f32 %v719_v59, %v703_v57 }
 0x490   :  { %2391 = vtanh.f32 %v2818_v60 }
 0x499   :  { %v2390_v61 = vpop.eup %2389 }
 0x49a   :  { %728 = vrot.lane.b32.xlu0 %v2390_v61, %s2596_s0 }
 0x49d   :  { %v2392_v62 = vpop.eup %2391 }
 0x49e   :  { %730 = vrot.lane.b32.xlu1 %v2392_v62, %s2596_s0 }
 0x4c1   :  { %v765_v0 = vpop.permute.xlu0 %764 }
 0x4c2   :  { %v2824_v1 = vadd.f32 %v765_v0, %v750_v35 }
 0x4c4   :  { %2393 = vtanh.f32 %v2824_v1 }
 0x4c5   :  { %v767_v3 = vpop.permute.xlu1 %766 }
 0x4c6   :  { %v2828_v4 = vadd.f32 %v767_v3, %v751_v38 }
 0x4c8   :  { %2395 = vtanh.f32 %v2828_v4 }
 0x4d1   :  { %v2394_v7 = vpop.eup %2393 }
 0x4d2   :  { %776 = vrot.lane.b32.xlu0 %v2394_v7, %s2596_s0 }
 0x4d5   :  { %v2396_v10 = vpop.eup %2395 }
 0x4d6   :  { %778 = vrot.lane.b32.xlu1 %v2396_v10, %s2596_s0 }
 0x50c   :  { %v729_v11 = vpop.permute.xlu0 %728 }
 0x50d   :  { %v734_v12 = vmul.f32 %v2378_v30, %v729_v11 }
 0x510   :  { %v731_v43 = vpop.permute.xlu1 %730 }
 0x511   :  { %v735_v21 = vmul.f32 %v2380_v33, %v731_v43 }
 0x513   :  { %v787_v22 = vpack.c.bf16 %v735_v21, %v734_v12 }
 0x515   :  { %789 = vrot.lane.b32.xlu0 %v787_v22, %s2597_s2 }
 0x544   :  { %v777_v13 = vpop.permute.xlu0 %776 }
 0x545   :  { %v782_v14 = vmul.f32 %v2386_v45, %v777_v13 }
 0x548   :  { %v779_v47 = vpop.permute.xlu1 %778 }
 0x549   :  { %v783_v15 = vmul.f32 %v2388_v50, %v779_v47 }
 0x54b   :  { %v842_v46 = vpack.c.bf16 %v783_v15, %v782_v14 }
 0x54d   :  { %844 = vrot.lane.b32.xlu1 %v842_v46, %s2597_s2 }
 0x587   :  { %v790_v56 = vpop.permute.xlu0 %789 }
 0x588   :  { %2222 = vmatmul.mubr.msk.bf16.vlgmr.msra.gmra.mxu1 %vm373_vm2, %v790_v56 }
 0x589   :  { %2226 = vmatpush3.bf16.msra.mxu1 %v2664_v8  ;;  %2229 = vmatprep.mubr.msk.bf16.mxu1 %vm2595_vm0, %v2594_v2 }
 0x58a   :  { %2227 = vmatprep.subr.bf16.mxu1 %v2594_v2 }
 0x58d   :  { %2228 = vmatpush3.bf16.msra.mxu1 %v2673_v9 }
 0x58e   :  { %2233 = vmatprep.subr.bf16.mxu1 %v2594_v2 }
 0x5bf   :  { %v845_v16 = vpop.permute.xlu1 %844 }
 0x5c0   :  { %2230 = vmatmul.mubr.msk.bf16.vlgmr.msra.gmra.mxu1 %vm373_vm2, %v845_v16 }
 0x5c1   :  { %2234 = vmatpush3.bf16.msra.mxu1 %v2643_v5  ;;  %2237 = vmatprep.mubr.msk.bf16.mxu1 %vm2595_vm0, %v2594_v2 }
 0x5c2   :  { %2235 = vmatprep.subr.bf16.mxu1 %v2594_v2 }
 0x5c5   :  { %2236 = vmatpush3.bf16.msra.mxu1 %v2651_v6  ;;  %v840_v6 = vld [vmem:[#allocation2 + $0x54] ss:$8 sps:$4 sm:$0xff]  }
 0x5c6   :  { %2241 = vmatprep.subr.bf16.mxu1 %v2594_v2  ;;  %v890_v27 = vunpack.c.l.bf16 %v840_v6  ;;  %v891_v31 = vunpack.c.h.bf16 %v840_v6 }
 0x648   :  { %v828_v19 = vpop.f32.mrf.mxu1 }
 0x649   :  { %v837_v20 = vadd.f32 %v835_v18, %v828_v19 }
 0x64a   :  { %v2223_v58 = vpop.f32.mrf.mxu1 }
 0x64b   :  { %2397 = vtanh.f32 %v837_v20  ;;  %v2087_v39 = vmul.f32 -1.442695, %v837_v20 }
 0x64c   :  { %v831_v23 = vpop.f32.mrf.mxu1 }
 0x64d   :  { %v838_v24 = vadd.f32 %v836_v63, %v831_v23 }
 0x64e   :  { %v2224_v25 = vpop.f32.mrf.mxu1 }
 0x64f   :  { %2399 = vtanh.f32 %v838_v24  ;;  %v2088_v40 = vmul.f32 -1.442695, %v838_v24 }
 0x658   :  { %v2398_v5 = vpop.eup %2397 }
 0x659   :  { %912 = vrot.lane.b32.xlu0 %v2398_v5, %s2596_s0 }
 0x65c   :  { %v2400_v26 = vpop.eup %2399 }
 0x65d   :  { %914 = vrot.lane.b32.xlu1 %v2400_v26, %s2596_s0 }
 0x680   :  { %v883_v28 = vpop.f32.mrf.mxu1 }
 0x681   :  { %v892_v29 = vadd.f32 %v890_v27, %v883_v28  ;;  %v2893_v28 = vld [vmem:[#allocation2 + $0x30] sm:$0xff]  }
 0x682   :  { %v2231_v30 = vpop.f32.mrf.mxu1 }
 0x683   :  { %2401 = vtanh.f32 %v892_v29  ;;  %v2089_v54 = vmul.f32 -1.442695, %v892_v29  ;;  %v1041_v29 = vunpack.c.l.bf16 %v2893_v28 }
 0x684   :  { %v886_v32 = vpop.f32.mrf.mxu1 }
 0x685   :  { %v893_v33 = vadd.f32 %v891_v31, %v886_v32  ;;  %v2896_v31 = vld [vmem:[#allocation2 + $0x38] sm:$0xff]  }
 0x686   :  { %v2232_v34 = vpop.f32.mrf.mxu1 }
 0x687   :  { %2403 = vtanh.f32 %v893_v33  ;;  %v2090_v57 = vmul.f32 -1.442695, %v893_v33 }
 0x688   :  { %2405 = vpow2.f32 %v2087_v39 }
 0x689   :  { %2407 = vpow2.f32 %v2088_v40  ;;  %v2901_v40 = vld [vmem:[#allocation2 + $0x44] sm:$0xff]  }
 0x690   :  { %v2402_v36 = vpop.eup %2401 }
 0x691   :  { %960 = vrot.lane.b32.xlu0 %v2402_v36, %s2596_s0 }
 0x694   :  { %v2404_v37 = vpop.eup %2403 }
 0x695   :  { %962 = vrot.lane.b32.xlu1 %v2404_v37, %s2596_s0  ;;  %v2406_v41 = vpop.eup %2405 }
 0x696   :  { %v900_v42 = vadd.f32 1.0, %v2406_v41  ;;  %v2408_v44 = vpop.eup %2407  ;;  %v1096_v41 = vunpack.c.l.bf16 %v2901_v40 }
 0x697   :  { %v901_v45 = vadd.f32 1.0, %v2408_v44  ;;  %v2904_v44 = vld [vmem:[#allocation2 + $0x4c] sm:$0xff]  }
 0x698   :  { %2409 = vrcp.f32 %v900_v42 }
 0x699   :  { %2411 = vrcp.f32 %v901_v45 }
 0x69a   :  { %2413 = vpow2.f32 %v2089_v54 }
 0x69b   :  { %2415 = vpow2.f32 %v2090_v57 }
 0x6a5   :  { %v2410_v48 = vpop.eup %2409 }
 0x6a6   :  { %v2412_v51 = vpop.eup %2411  ;;  %v908_v43 = vmul.f32 %v2410_v48, %v2814_v55 }
 0x6a7   :  { %v2414_v59 = vpop.eup %2413  ;;  %v909_v22 = vmul.f32 %v2412_v51, %v2818_v60 }
 0x6a8   :  { %v948_v61 = vadd.f32 1.0, %v2414_v59  ;;  %v2416_v62 = vpop.eup %2415 }
 0x6a9   :  { %v949_v35 = vadd.f32 1.0, %v2416_v62 }
 0x6aa   :  { %2417 = vrcp.f32 %v948_v61 }
 0x6ab   :  { %2419 = vrcp.f32 %v949_v35 }
 0x6b7   :  { %v2418_v0 = vpop.eup %2417 }
 0x6b8   :  { %v2420_v7 = vpop.eup %2419  ;;  %v956_v55 = vmul.f32 %v2418_v0, %v2824_v1 }
 0x6b9   :  { %v957_v60 = vmul.f32 %v2420_v7, %v2828_v4 }
 0x6cb   :  { %v913_v49 = vpop.permute.xlu0 %912 }
 0x6cc   :  { %v918_v50 = vmul.f32 %v2410_v48, %v913_v49  ;;  %v1097_v49 = vunpack.c.l.bf16 %v2904_v44 }
 0x6ce   :  { %922 = vrot.lane.b32.xlu0 %v918_v50, %s2597_s2 }
 0x6cf   :  { %v915_v52 = vpop.permute.xlu1 %914 }
 0x6d0   :  { %v919_v53 = vmul.f32 %v2412_v51, %v915_v52 }
 0x6d2   :  { %924 = vrot.lane.b32.xlu1 %v919_v53, %s2597_s2 }
 0x703   :  { %v961_v38 = vpop.permute.xlu0 %960 }
 0x704   :  { %v966_v3 = vmul.f32 %v2418_v0, %v961_v38 }
 0x706   :  { %970 = vrot.lane.b32.xlu0 %v966_v3, %s2597_s2 }
 0x707   :  { %v963_v10 = vpop.permute.xlu1 %962 }
 0x708   :  { %v967_v11 = vmul.f32 %v2420_v7, %v963_v10 }
 0x70a   :  { %972 = vrot.lane.b32.xlu1 %v967_v11, %s2597_s2 }
 0x740   :  { %v923_v12 = vpop.permute.xlu0 %922 }
 0x741   :  { %v2858_v21 = vadd.f32 %v923_v12, %v908_v43 }
 0x743   :  { %2421 = vtanh.f32 %v2858_v21 }
 0x744   :  { %v925_v13 = vpop.permute.xlu1 %924 }
 0x745   :  { %v2862_v47 = vadd.f32 %v925_v13, %v909_v22 }
 0x747   :  { %2423 = vtanh.f32 %v2862_v47 }
 0x750   :  { %v2422_v14 = vpop.eup %2421 }
 0x751   :  { %934 = vrot.lane.b32.xlu0 %v2422_v14, %s2596_s0 }
 0x754   :  { %v2424_v15 = vpop.eup %2423 }
 0x755   :  { %936 = vrot.lane.b32.xlu1 %v2424_v15, %s2596_s0 }
 0x778   :  { %v971_v46 = vpop.permute.xlu0 %970 }
 0x779   :  { %v2868_v56 = vadd.f32 %v971_v46, %v956_v55 }
 0x77b   :  { %2425 = vtanh.f32 %v2868_v56 }
 0x77c   :  { %v973_v16 = vpop.permute.xlu1 %972 }
 0x77d   :  { %v2872_v17 = vadd.f32 %v973_v16, %v957_v60 }
 0x77f   :  { %2427 = vtanh.f32 %v2872_v17 }
 0x788   :  { %v2426_v18 = vpop.eup %2425 }
 0x789   :  { %982 = vrot.lane.b32.xlu0 %v2426_v18, %s2596_s0 }
 0x78c   :  { %v2428_v19 = vpop.eup %2427 }
 0x78d   :  { %984 = vrot.lane.b32.xlu1 %v2428_v19, %s2596_s0 }
 0x7c3   :  { %v935_v20 = vpop.permute.xlu0 %934 }
 0x7c4   :  { %v940_v58 = vmul.f32 %v2410_v48, %v935_v20 }
 0x7c7   :  { %v937_v1 = vpop.permute.xlu1 %936 }
 0x7c8   :  { %v941_v63 = vmul.f32 %v2412_v51, %v937_v1 }
 0x7ca   :  { %v993_v23 = vpack.c.bf16 %v941_v63, %v940_v58 }
 0x7cc   :  { %995 = vrot.lane.b32.xlu0 %v993_v23, %s2597_s2 }
 0x7fb   :  { %v983_v24 = vpop.permute.xlu0 %982 }
 0x7fc   :  { %v988_v25 = vmul.f32 %v2418_v0, %v983_v24 }
 0x7ff   :  { %v985_v4 = vpop.permute.xlu1 %984 }
 0x800   :  { %v989_v5 = vmul.f32 %v2420_v7, %v985_v4 }
 0x802   :  { %v1048_v26 = vpack.c.bf16 %v989_v5, %v988_v25 }
 0x804   :  { %1050 = vrot.lane.b32.xlu1 %v1048_v26, %s2597_s2 }
 0x83e   :  { %v996_v6 = vpop.permute.xlu0 %995 }
 0x83f   :  { %2238 = vmatmul.mubr.msk.bf16.vlgmr.msra.gmra.mxu1 %vm373_vm2, %v996_v6 }
 0x840   :  { %2242 = vmatpush3.bf16.msra.mxu1 %v2664_v8  ;;  %2245 = vmatprep.mubr.msk.bf16.mxu1 %vm2595_vm0, %v2594_v2 }
 0x841   :  { %2243 = vmatprep.subr.bf16.mxu1 %v2594_v2 }
 0x844   :  { %2244 = vmatpush3.bf16.msra.mxu1 %v2673_v9 }
 0x845   :  { %2257 = vmatprep.subr.bf16.mxu1 %v2594_v2 }
 0x876   :  { %v1051_v27 = vpop.permute.xlu1 %1050 }
 0x877   :  { %2246 = vmatmul.mubr.msk.bf16.vlgmr.msra.gmra.mxu1 %vm373_vm2, %v1051_v27 }
 0x878   :  { %2258 = vmatpush3.bf16.msra.mxu1 %v2664_v8  ;;  %2261 = vmatprep.mubr.msk.bf16.mxu1 %vm2595_vm0, %v2594_v2  ;;  %v1042_v8 = vunpack.c.l.bf16 %v2896_v31 }
 0x879   :  { %2259 = vmatprep.subr.bf16.mxu1 %v2594_v2 }
 0x87c   :  { %2260 = vmatpush3.bf16.msra.mxu1 %v2673_v9 }
 0x87d   :  { %2273 = vmatprep.subr.bf16.mxu1 %v2594_v2 }
 0x8ff   :  { %v1034_v30 = vpop.f32.mrf.mxu1 }
 0x900   :  { %v1043_v32 = vadd.f32 %v1041_v29, %v1034_v30 }
 0x901   :  { %v2239_v33 = vpop.f32.mrf.mxu1 }
 0x902   :  { %2429 = vtanh.f32 %v1043_v32  ;;  %v2093_v57 = vmul.f32 -1.442695, %v1043_v32 }
 0x903   :  { %v1037_v34 = vpop.f32.mrf.mxu1 }
 0x904   :  { %v1044_v36 = vadd.f32 %v1042_v8, %v1037_v34 }
 0x905   :  { %v2240_v37 = vpop.f32.mrf.mxu1 }
 0x906   :  { %2431 = vtanh.f32 %v1044_v36  ;;  %v2094_v59 = vmul.f32 -1.442695, %v1044_v36 }
 0x90f   :  { %v2430_v39 = vpop.eup %2429 }
 0x910   :  { %1118 = vrot.lane.b32.xlu0 %v2430_v39, %s2596_s0 }
 0x913   :  { %v2432_v9 = vpop.eup %2431 }
 0x914   :  { %1120 = vrot.lane.b32.xlu1 %v2432_v9, %s2596_s0 }
 0x937   :  { %v1089_v42 = vpop.f32.mrf.mxu1 }
 0x938   :  { %v1098_v45 = vadd.f32 %v1096_v41, %v1089_v42 }
 0x939   :  { %v2247_v48 = vpop.f32.mrf.mxu1 }
 0x93a   :  { %2433 = vtanh.f32 %v1098_v45  ;;  %v2095_v12 = vmul.f32 -1.442695, %v1098_v45  ;;  %v2939_v45 = vld [vmem:[%s3131_s3 + $0x8] sm:$0xff]   ;;  %v2948_v48 = vld [vmem:[%s3131_s3] sm:$0xff]  }
 0x93b   :  { %v1092_v50 = vpop.f32.mrf.mxu1 }
 0x93c   :  { %v1099_v51 = vadd.f32 %v1097_v49, %v1092_v50  ;;  %v2956_v50 = vld [vmem:[%s3132_s4 + $0x8] sm:$0xff]  }
 0x93d   :  { %v2248_v52 = vpop.f32.mrf.mxu1 }
 0x93e   :  { %2435 = vtanh.f32 %v1099_v51  ;;  %v2096_v22 = vmul.f32 -1.442695, %v1099_v51  ;;  %v2965_v51 = vld [vmem:[%s3132_s4] sm:$0xff]  }
 0x93f   :  { %2437 = vpow2.f32 %v2093_v57  ;;  %v2969_v52 = vld [vmem:[#allocation2 + $0x40] ss:$24 sps:$4 sm:$0xff]  }
 0x940   :  { %2439 = vpow2.f32 %v2094_v59 }
 0x947   :  { %v2434_v53 = vpop.eup %2433 }
 0x948   :  { %1166 = vrot.lane.b32.xlu0 %v2434_v53, %s2596_s0  ;;  %v1246_v53 = vunpack.c.l.bf16 %v2969_v52 }
 0x94b   :  { %v2436_v54 = vpop.eup %2435 }
 0x94c   :  { %1168 = vrot.lane.b32.xlu1 %v2436_v54, %s2596_s0  ;;  %v2438_v61 = vpop.eup %2437 }
 0x94d   :  { %v1106_v62 = vadd.f32 1.0, %v2438_v61  ;;  %v2440_v35 = vpop.eup %2439  ;;  %v1247_v61 = vunpack.c.h.bf16 %v2901_v40 }
 0x94e   :  { %v1107_v0 = vadd.f32 1.0, %v2440_v35 }
 0x94f   :  { %2441 = vrcp.f32 %v1106_v62 }
 0x950   :  { %2443 = vrcp.f32 %v1107_v0 }
 0x951   :  { %2445 = vpow2.f32 %v2095_v12  ;;  %v1301_v12 = vunpack.c.h.bf16 %v2896_v31 }
 0x952   :  { %2447 = vpow2.f32 %v2096_v22 }
 0x95c   :  { %v2442_v38 = vpop.eup %2441 }
 0x95d   :  { %v2444_v10 = vpop.eup %2443  ;;  %v1114_v1 = vmul.f32 %v2442_v38, %v2858_v21 }
 0x95e   :  { %v2446_v13 = vpop.eup %2445  ;;  %v1115_v23 = vmul.f32 %v2444_v10, %v2862_v47 }
 0x95f   :  { %v1154_v14 = vadd.f32 1.0, %v2446_v13  ;;  %v2448_v15 = vpop.eup %2447 }
 0x960   :  { %v1155_v55 = vadd.f32 1.0, %v2448_v15 }
 0x961   :  { %2449 = vrcp.f32 %v1154_v14 }
 0x962   :  { %2451 = vrcp.f32 %v1155_v55 }
 0x96e   :  { %v2450_v46 = vpop.eup %2449 }
 0x96f   :  { %v2452_v18 = vpop.eup %2451  ;;  %v1162_v21 = vmul.f32 %v2450_v46, %v2868_v56 }
 0x970   :  { %v1163_v47 = vmul.f32 %v2452_v18, %v2872_v17 }
 0x982   :  { %v1119_v3 = vpop.permute.xlu0 %1118 }
 0x983   :  { %v1124_v7 = vmul.f32 %v2442_v38, %v1119_v3 }
 0x985   :  { %1128 = vrot.lane.b32.xlu0 %v1124_v7, %s2597_s2  ;;  %v1300_v7 = vunpack.c.h.bf16 %v2893_v28 }
 0x986   :  { %v1121_v11 = vpop.permute.xlu1 %1120 }
 0x987   :  { %v1125_v43 = vmul.f32 %v2444_v10, %v1121_v11 }
 0x989   :  { %1130 = vrot.lane.b32.xlu1 %v1125_v43, %s2597_s2 }
 0x9ba   :  { %v1167_v60 = vpop.permute.xlu0 %1166 }
 0x9bb   :  { %v1172_v16 = vmul.f32 %v2450_v46, %v1167_v60 }
 0x9bd   :  { %1176 = vrot.lane.b32.xlu0 %v1172_v16, %s2597_s2 }
 0x9be   :  { %v1169_v19 = vpop.permute.xlu1 %1168 }
 0x9bf   :  { %v1173_v20 = vmul.f32 %v2452_v18, %v1169_v19 }
 0x9c1   :  { %1178 = vrot.lane.b32.xlu1 %v1173_v20, %s2597_s2 }
 0x9f7   :  { %v1129_v58 = vpop.permute.xlu0 %1128 }
 0x9f8   :  { %v2914_v63 = vadd.f32 %v1129_v58, %v1114_v1 }
 0x9fa   :  { %2453 = vtanh.f32 %v2914_v63 }
 0x9fb   :  { %v1131_v24 = vpop.permute.xlu1 %1130 }
 0x9fc   :  { %v2918_v4 = vadd.f32 %v1131_v24, %v1115_v23 }
 0x9fe   :  { %2455 = vtanh.f32 %v2918_v4 }
 0xa07   :  { %v2454_v25 = vpop.eup %2453 }
 0xa08   :  { %1140 = vrot.lane.b32.xlu0 %v2454_v25, %s2596_s0 }
 0xa0b   :  { %v2456_v5 = vpop.eup %2455 }
 0xa0c   :  { %1142 = vrot.lane.b32.xlu1 %v2456_v5, %s2596_s0 }
 0xa2f   :  { %v1177_v26 = vpop.permute.xlu0 %1176 }
 0xa30   :  { %v2924_v6 = vadd.f32 %v1177_v26, %v1162_v21 }
 0xa32   :  { %2457 = vtanh.f32 %v2924_v6 }
 0xa33   :  { %v1179_v27 = vpop.permute.xlu1 %1178 }
 0xa34   :  { %v2928_v29 = vadd.f32 %v1179_v27, %v1163_v47 }
 0xa36   :  { %2459 = vtanh.f32 %v2928_v29 }
 0xa3f   :  { %v2458_v30 = vpop.eup %2457 }
 0xa40   :  { %1188 = vrot.lane.b32.xlu0 %v2458_v30, %s2596_s0 }
 0xa43   :  { %v2460_v32 = vpop.eup %2459 }
 0xa44   :  { %1190 = vrot.lane.b32.xlu1 %v2460_v32, %s2596_s0 }
 0xa7a   :  { %v1141_v33 = vpop.permute.xlu0 %1140 }
 0xa7b   :  { %v1146_v8 = vmul.f32 %v2442_v38, %v1141_v33 }
 0xa7e   :  { %v1143_v56 = vpop.permute.xlu1 %1142 }
 0xa7f   :  { %v1147_v34 = vmul.f32 %v2444_v10, %v1143_v56 }
 0xa81   :  { %v1198_v36 = vpack.c.bf16 %v1147_v34, %v1146_v8 }
 0xa83   :  { %1200 = vrot.lane.b32.xlu0 %v1198_v36, %s2597_s2 }
 0xab2   :  { %v1189_v37 = vpop.permute.xlu0 %1188 }
 0xab3   :  { %v1194_v39 = vmul.f32 %v2450_v46, %v1189_v37 }
 0xab6   :  { %v1191_v17 = vpop.permute.xlu1 %1190 }
 0xab7   :  { %v1195_v9 = vmul.f32 %v2452_v18, %v1191_v17 }
 0xab9   :  { %v1252_v41 = vpack.c.bf16 %v1195_v9, %v1194_v39 }
 0xabb   :  { %1254 = vrot.lane.b32.xlu1 %v1252_v41, %s2597_s2 }
 0xaf5   :  { %v1201_v42 = vpop.permute.xlu0 %1200 }
 0xaf6   :  { %2254 = vmatmul.mubr.msk.bf16.vlgmr.msra.gmra.mxu0 %vm373_vm2, %v1201_v42 }
 0xaf7   :  { %2266 = vmatpush3.bf16.msra.mxu0 %v2939_v45  ;;  %2269 = vmatprep.mubr.msk.bf16.mxu0 %vm2595_vm0, %v2594_v2 }
 0xaf8   :  { %2267 = vmatprep.subr.bf16.mxu0 %v2594_v2 }
 0xafb   :  { %2268 = vmatpush3.bf16.msra.mxu0 %v2948_v48 }
 0xafc   :  { %2281 = vmatprep.subr.bf16.mxu0 %v2594_v2 }
 0xb2d   :  { %v1255_v49 = vpop.permute.xlu1 %1254 }
 0xb2e   :  { %2262 = vmatmul.mubr.msk.bf16.vlgmr.msra.gmra.mxu1 %vm373_vm2, %v1255_v49 }
 0xb2f   :  { %2274 = vmatpush3.bf16.msra.mxu1 %v2956_v50  ;;  %2277 = vmatprep.mubr.msk.bf16.mxu1 %vm2595_vm0, %v2594_v2 }
 0xb30   :  { %2275 = vmatprep.subr.bf16.mxu1 %v2594_v2 }
 0xb33   :  { %2276 = vmatpush3.bf16.msra.mxu1 %v2965_v51 }
 0xb34   :  { %2289 = vmatprep.subr.bf16.mxu1 %v2594_v2 }
 0xbb6   :  { %v1239_v54 = vpop.f32.mrf.mxu0 }
 0xbb7   :  { %v1248_v57 = vadd.f32 %v1246_v53, %v1239_v54 }
 0xbb8   :  { %v2255_v59 = vpop.f32.mrf.mxu0 }
 0xbb9   :  { %2461 = vtanh.f32 %v1248_v57  ;;  %v2099_v55 = vmul.f32 -1.442695, %v1248_v57 }
 0xbba   :  { %v1242_v62 = vpop.f32.mrf.mxu0 }
 0xbbb   :  { %v1249_v35 = vadd.f32 %v1247_v61, %v1242_v62 }
 0xbbc   :  { %v2256_v0 = vpop.f32.mrf.mxu0 }
 0xbbd   :  { %2463 = vtanh.f32 %v1249_v35  ;;  %v2100_v46 = vmul.f32 -1.442695, %v1249_v35 }
 0xbc6   :  { %v2462_v38 = vpop.eup %2461 }
 0xbc7   :  { %1322 = vrot.lane.b32.xlu0 %v2462_v38, %s2596_s0 }
 0xbca   :  { %v2464_v3 = vpop.eup %2463 }
 0xbcb   :  { %1324 = vrot.lane.b32.xlu1 %v2464_v3, %s2596_s0 }
 0xbee   :  { %v1293_v10 = vpop.f32.mrf.mxu1 }
 0xbef   :  { %v1302_v11 = vadd.f32 %v1300_v7, %v1293_v10 }
 0xbf0   :  { %v2263_v43 = vpop.f32.mrf.mxu1 }
 0xbf1   :  { %2465 = vtanh.f32 %v1302_v11  ;;  %v2101_v24 = vmul.f32 -1.442695, %v1302_v11 }
 0xbf2   :  { %v1296_v22 = vpop.f32.mrf.mxu1 }
 0xbf3   :  { %v1303_v40 = vadd.f32 %v1301_v12, %v1296_v22  ;;  %v1450_v22 = vunpack.c.h.bf16 %v2904_v44 }
 0xbf4   :  { %v2264_v13 = vpop.f32.mrf.mxu1 }
 0xbf5   :  { %2467 = vtanh.f32 %v1303_v40  ;;  %v2102_v25 = vmul.f32 -1.442695, %v1303_v40 }
 0xbf6   :  { %2469 = vpow2.f32 %v2099_v55 }
 0xbf7   :  { %2471 = vpow2.f32 %v2100_v46 }
 0xbfe   :  { %v2466_v14 = vpop.eup %2465 }
 0xbff   :  { %1370 = vrot.lane.b32.xlu0 %v2466_v14, %s2596_s0 }
 0xc02   :  { %v2468_v15 = vpop.eup %2467 }
 0xc03   :  { %1372 = vrot.lane.b32.xlu1 %v2468_v15, %s2596_s0  ;;  %v2470_v28 = vpop.eup %2469  ;;  %v1451_v15 = vunpack.c.h.bf16 %v2969_v52 }
 0xc04   :  { %v1310_v60 = vadd.f32 1.0, %v2470_v28  ;;  %v2472_v16 = vpop.eup %2471 }
 0xc05   :  { %v1311_v18 = vadd.f32 1.0, %v2472_v16 }
 0xc06   :  { %2473 = vrcp.f32 %v1310_v60 }
 0xc07   :  { %2475 = vrcp.f32 %v1311_v18  ;;  %v1454_v18 = vld [vmem:[#allocation2 + $0x24] ss:$8 sps:$4 sm:$0xff]  }
 0xc08   :  { %2477 = vpow2.f32 %v2101_v24 }
 0xc09   :  { %2479 = vpow2.f32 %v2102_v25 }
 0xc13   :  { %v2474_v31 = vpop.eup %2473 }
 0xc14   :  { %v2476_v1 = vpop.eup %2475  ;;  %v1318_v34 = vmul.f32 %v2474_v31, %v2914_v63 }
 0xc15   :  { %v2478_v5 = vpop.eup %2477  ;;  %v1319_v17 = vmul.f32 %v2476_v1, %v2918_v4 }
 0xc16   :  { %v1358_v21 = vadd.f32 1.0, %v2478_v5  ;;  %v2480_v26 = vpop.eup %2479 }
 0xc17   :  { %v1359_v47 = vadd.f32 1.0, %v2480_v26 }
 0xc18   :  { %2481 = vrcp.f32 %v1358_v21 }
 0xc19   :  { %2483 = vrcp.f32 %v1359_v47 }
 0xc25   :  { %v2482_v27 = vpop.eup %2481 }
 0xc26   :  { %v2484_v33 = vpop.eup %2483  ;;  %v1366_v63 = vmul.f32 %v2482_v27, %v2924_v6 }
 0xc27   :  { %v1367_v4 = vmul.f32 %v2484_v33, %v2928_v29 }
 0xc39   :  { %v1323_v19 = vpop.permute.xlu0 %1322 }
 0xc3a   :  { %v1328_v20 = vmul.f32 %v2474_v31, %v1323_v19 }
 0xc3c   :  { %1332 = vrot.lane.b32.xlu0 %v1328_v20, %s2597_s2 }
 0xc3d   :  { %v1325_v58 = vpop.permute.xlu1 %1324 }
 0xc3e   :  { %v1329_v23 = vmul.f32 %v2476_v1, %v1325_v58 }
 0xc40   :  { %1334 = vrot.lane.b32.xlu1 %v1329_v23, %s2597_s2 }
 0xc71   :  { %v1371_v30 = vpop.permute.xlu0 %1370 }
 0xc72   :  { %v1376_v32 = vmul.f32 %v2482_v27, %v1371_v30 }
 0xc74   :  { %1380 = vrot.lane.b32.xlu0 %v1376_v32, %s2597_s2 }
 0xc75   :  { %v1373_v56 = vpop.permute.xlu1 %1372 }
 0xc76   :  { %v1377_v8 = vmul.f32 %v2484_v33, %v1373_v56 }
 0xc78   :  { %1382 = vrot.lane.b32.xlu1 %v1377_v8, %s2597_s2 }
 0xcae   :  { %v1333_v36 = vpop.permute.xlu0 %1332 }
 0xcaf   :  { %v2984_v37 = vadd.f32 %v1333_v36, %v1318_v34 }
 0xcb1   :  { %2485 = vtanh.f32 %v2984_v37 }
 0xcb2   :  { %v1335_v39 = vpop.permute.xlu1 %1334 }
 0xcb3   :  { %v2988_v9 = vadd.f32 %v1335_v39, %v1319_v17 }
 0xcb5   :  { %2487 = vtanh.f32 %v2988_v9 }
 0xcbe   :  { %v2486_v41 = vpop.eup %2485 }
 0xcbf   :  { %1344 = vrot.lane.b32.xlu0 %v2486_v41, %s2596_s0 }
 0xcc2   :  { %v2488_v42 = vpop.eup %2487 }
 0xcc3   :  { %1346 = vrot.lane.b32.xlu1 %v2488_v42, %s2596_s0 }
 0xce6   :  { %v1381_v49 = vpop.permute.xlu0 %1380 }
 0xce7   :  { %v2994_v53 = vadd.f32 %v1381_v49, %v1366_v63 }
 0xce9   :  { %2489 = vtanh.f32 %v2994_v53 }
 0xcea   :  { %v1383_v54 = vpop.permute.xlu1 %1382 }
 0xceb   :  { %v2998_v57 = vadd.f32 %v1383_v54, %v1367_v4 }
 0xced   :  { %2491 = vtanh.f32 %v2998_v57 }
 0xcf6   :  { %v2490_v59 = vpop.eup %2489 }
 0xcf7   :  { %1392 = vrot.lane.b32.xlu0 %v2490_v59, %s2596_s0 }
 0xcfa   :  { %v2492_v61 = vpop.eup %2491 }
 0xcfb   :  { %1394 = vrot.lane.b32.xlu1 %v2492_v61, %s2596_s0 }
 0xd31   :  { %v1345_v62 = vpop.permute.xlu0 %1344 }
 0xd32   :  { %v1350_v35 = vmul.f32 %v2474_v31, %v1345_v62  ;;  %v1504_v31 = vunpack.c.l.bf16 %v1454_v18 }
 0xd35   :  { %v1347_v6 = vpop.permute.xlu1 %1346 }
 0xd36   :  { %v1351_v0 = vmul.f32 %v2476_v1, %v1347_v6  ;;  %v1505_v1 = vunpack.c.h.bf16 %v1454_v18 }
 0xd38   :  { %v1402_v38 = vpack.c.bf16 %v1351_v0, %v1350_v35 }
 0xd3a   :  { %1404 = vrot.lane.b32.xlu0 %v1402_v38, %s2597_s2 }
 0xd69   :  { %v1393_v3 = vpop.permute.xlu0 %1392 }
 0xd6a   :  { %v1398_v7 = vmul.f32 %v2482_v27, %v1393_v3 }
 0xd6d   :  { %v1395_v29 = vpop.permute.xlu1 %1394 }
 0xd6e   :  { %v1399_v10 = vmul.f32 %v2484_v33, %v1395_v29 }
 0xd70   :  { %v1456_v11 = vpack.c.bf16 %v1399_v10, %v1398_v7 }
 0xd72   :  { %1458 = vrot.lane.b32.xlu1 %v1456_v11, %s2597_s2 }
 0xdac   :  { %v1405_v43 = vpop.permute.xlu0 %1404 }
 0xdad   :  { %2270 = vmatmul.mubr.msk.bf16.vlgmr.msra.gmra.mxu0 %vm373_vm2, %v1405_v43 }
 0xdae   :  { %2282 = vmatpush3.bf16.msra.mxu0 %v2939_v45  ;;  %2285 = vmatprep.mubr.msk.bf16.mxu0 %vm2595_vm0, %v2594_v2 }
 0xdaf   :  { %2283 = vmatprep.subr.bf16.mxu0 %v2594_v2 }
 0xdb2   :  { %2284 = vmatpush3.bf16.msra.mxu0 %v2948_v48 }
 0xdb3   :  { %2297 = vmatprep.subr.bf16.mxu0 %v2594_v2 }
 0xde4   :  { %v1459_v12 = vpop.permute.xlu1 %1458 }
 0xde5   :  { %2278 = vmatmul.mubr.msk.bf16.vlgmr.msra.gmra.mxu1 %vm373_vm2, %v1459_v12 }
 0xde6   :  { %2290 = vmatpush3.bf16.msra.mxu1 %v2956_v50  ;;  %2293 = vmatprep.mubr.msk.bf16.mxu1 %vm2595_vm0, %v2594_v2 }
 0xde7   :  { %2291 = vmatprep.subr.bf16.mxu1 %v2594_v2 }
 0xdea   :  { %2292 = vmatpush3.bf16.msra.mxu1 %v2965_v51 }
 0xdeb   :  { %2305 = vmatprep.subr.bf16.mxu1 %v2594_v2 }
 0xe6d   :  { %v1443_v40 = vpop.f32.mrf.mxu0 }
 0xe6e   :  { %v1452_v13 = vadd.f32 %v1450_v22, %v1443_v40 }
 0xe6f   :  { %v2271_v14 = vpop.f32.mrf.mxu0 }
 0xe70   :  { %2493 = vtanh.f32 %v1452_v13  ;;  %v2105_v5 = vmul.f32 -1.442695, %v1452_v13 }
 0xe71   :  { %v1446_v55 = vpop.f32.mrf.mxu0 }
 0xe72   :  { %v1453_v46 = vadd.f32 %v1451_v15, %v1446_v55 }
 0xe73   :  { %v2272_v28 = vpop.f32.mrf.mxu0 }
 0xe74   :  { %2495 = vtanh.f32 %v1453_v46  ;;  %v2106_v21 = vmul.f32 -1.442695, %v1453_v46 }
 0xe7d   :  { %v2494_v60 = vpop.eup %2493 }
 0xe7e   :  { %1526 = vrot.lane.b32.xlu0 %v2494_v60, %s2596_s0 }
 0xe81   :  { %v2496_v16 = vpop.eup %2495 }
 0xe82   :  { %1528 = vrot.lane.b32.xlu1 %v2496_v16, %s2596_s0 }
 0xea5   :  { %v1497_v19 = vpop.f32.mrf.mxu1 }
 0xea6   :  { %v1506_v44 = vadd.f32 %v1504_v31, %v1497_v19 }
 0xea7   :  { %v2279_v20 = vpop.f32.mrf.mxu1 }
 0xea8   :  { %2497 = vtanh.f32 %v1506_v44  ;;  %v2107_v17 = vmul.f32 -1.442695, %v1506_v44 }
 0xea9   :  { %v1500_v58 = vpop.f32.mrf.mxu1 }
 0xeaa   :  { %v1507_v23 = vadd.f32 %v1505_v1, %v1500_v58 }
 0xeab   :  { %v2280_v52 = vpop.f32.mrf.mxu1 }
 0xeac   :  { %2499 = vtanh.f32 %v1507_v23  ;;  %v2108_v39 = vmul.f32 -1.442695, %v1507_v23 }
 0xead   :  { %2501 = vpow2.f32 %v2105_v5 }
 0xeae   :  { %2503 = vpow2.f32 %v2106_v21 }
 0xeb5   :  { %v2498_v24 = vpop.eup %2497 }
 0xeb6   :  { %1574 = vrot.lane.b32.xlu0 %v2498_v24, %s2596_s0 }
 0xeb9   :  { %v2500_v25 = vpop.eup %2499 }
 0xeba   :  { %1576 = vrot.lane.b32.xlu1 %v2500_v25, %s2596_s0  ;;  %v2502_v26 = vpop.eup %2501 }
 0xebb   :  { %v1514_v47 = vadd.f32 1.0, %v2502_v26  ;;  %v2504_v27 = vpop.eup %2503 }
 0xebc   :  { %v1515_v30 = vadd.f32 1.0, %v2504_v27 }
 0xebd   :  { %2505 = vrcp.f32 %v1514_v47 }
 0xebe   :  { %2507 = vrcp.f32 %v1515_v30 }
 0xebf   :  { %2509 = vpow2.f32 %v2107_v17 }
 0xec0   :  { %2511 = vpow2.f32 %v2108_v39 }
 0xeca   :  { %v2506_v32 = vpop.eup %2505 }
 0xecb   :  { %v2508_v8 = vpop.eup %2507  ;;  %v1522_v35 = vmul.f32 %v2506_v32, %v2984_v37 }
 0xecc   :  { %v2510_v41 = vpop.eup %2509  ;;  %v1523_v3 = vmul.f32 %v2508_v8, %v2988_v9 }
 0xecd   :  { %v1562_v42 = vadd.f32 1.0, %v2510_v41  ;;  %v2512_v63 = vpop.eup %2511 }
 0xece   :  { %v1563_v49 = vadd.f32 1.0, %v2512_v63 }
 0xecf   :  { %2513 = vrcp.f32 %v1562_v42 }
 0xed0   :  { %2515 = vrcp.f32 %v1563_v49 }
 0xedc   :  { %v2514_v4 = vpop.eup %2513 }
 0xedd   :  { %v2516_v61 = vpop.eup %2515  ;;  %v1570_v37 = vmul.f32 %v2514_v4, %v2994_v53 }
 0xede   :  { %v1571_v9 = vmul.f32 %v2516_v61, %v2998_v57 }
 0xef0   :  { %v1527_v33 = vpop.permute.xlu0 %1526 }
 0xef1   :  { %v1532_v56 = vmul.f32 %v2506_v32, %v1527_v33 }
 0xef3   :  { %1536 = vrot.lane.b32.xlu0 %v1532_v56, %s2597_s2 }
 0xef4   :  { %v1529_v34 = vpop.permute.xlu1 %1528 }
 0xef5   :  { %v1533_v36 = vmul.f32 %v2508_v8, %v1529_v34 }
 0xef7   :  { %1538 = vrot.lane.b32.xlu1 %v1533_v36, %s2597_s2 }
 0xf28   :  { %v1575_v54 = vpop.permute.xlu0 %1574 }
 0xf29   :  { %v1580_v59 = vmul.f32 %v2514_v4, %v1575_v54 }
 0xf2b   :  { %1584 = vrot.lane.b32.xlu0 %v1580_v59, %s2597_s2 }
 0xf2c   :  { %v1577_v62 = vpop.permute.xlu1 %1576 }
 0xf2d   :  { %v1581_v6 = vmul.f32 %v2516_v61, %v1577_v62 }
 0xf2f   :  { %1586 = vrot.lane.b32.xlu1 %v1581_v6, %s2597_s2 }
 0xf65   :  { %v1537_v0 = vpop.permute.xlu0 %1536 }
 0xf66   :  { %v3030_v38 = vadd.f32 %v1537_v0, %v1522_v35 }
 0xf68   :  { %2517 = vtanh.f32 %v3030_v38 }
 0xf69   :  { %v1539_v29 = vpop.permute.xlu1 %1538 }
 0xf6a   :  { %v3034_v7 = vadd.f32 %v1539_v29, %v1523_v3 }
 0xf6c   :  { %2519 = vtanh.f32 %v3034_v7 }
 0xf75   :  { %v2518_v10 = vpop.eup %2517 }
 0xf76   :  { %1548 = vrot.lane.b32.xlu0 %v2518_v10, %s2596_s0 }
 0xf79   :  { %v2520_v11 = vpop.eup %2519 }
 0xf7a   :  { %1550 = vrot.lane.b32.xlu1 %v2520_v11, %s2596_s0 }
 0xf9d   :  { %v1585_v43 = vpop.permute.xlu0 %1584 }
 0xf9e   :  { %v3040_v12 = vadd.f32 %v1585_v43, %v1570_v37 }
 0xfa0   :  { %2521 = vtanh.f32 %v3040_v12 }
 0xfa1   :  { %v1587_v22 = vpop.permute.xlu1 %1586 }
 0xfa2   :  { %v3044_v40 = vadd.f32 %v1587_v22, %v1571_v9 }
 0xfa4   :  { %2523 = vtanh.f32 %v3044_v40 }
 0xfad   :  { %v2522_v13 = vpop.eup %2521 }
 0xfae   :  { %1596 = vrot.lane.b32.xlu0 %v2522_v13, %s2596_s0 }
 0xfb1   :  { %v2524_v14 = vpop.eup %2523 }
 0xfb2   :  { %1598 = vrot.lane.b32.xlu1 %v2524_v14, %s2596_s0 }
 0xfe8   :  { %v1549_v15 = vpop.permute.xlu0 %1548 }
 0xfe9   :  { %v1554_v55 = vmul.f32 %v2506_v32, %v1549_v15 }
 0xfec   :  { %v1551_v53 = vpop.permute.xlu1 %1550 }
 0xfed   :  { %v1555_v46 = vmul.f32 %v2508_v8, %v1551_v53 }
 0xfef   :  { %v1606_v28 = vpack.c.bf16 %v1555_v46, %v1554_v55 }
 0xff1   :  { %1608 = vrot.lane.b32.xlu0 %v1606_v28, %s2597_s2 }
0x1020   :  { %v1597_v60 = vpop.permute.xlu0 %1596 }
0x1021   :  { %v1602_v16 = vmul.f32 %v2514_v4, %v1597_v60 }
0x1024   :  { %v1599_v57 = vpop.permute.xlu1 %1598 }
0x1025   :  { %v1603_v18 = vmul.f32 %v2516_v61, %v1599_v57 }
0x1027   :  { %v1660_v31 = vpack.c.bf16 %v1603_v18, %v1602_v16 }
0x1029   :  { %1662 = vrot.lane.b32.xlu1 %v1660_v31, %s2597_s2 }
0x1063   :  { %v1609_v19 = vpop.permute.xlu0 %1608 }
0x1064   :  { %2286 = vmatmul.mubr.msk.bf16.vlgmr.msra.gmra.mxu0 %vm373_vm2, %v1609_v19 }
0x1065   :  { %2298 = vmatpush3.bf16.msra.mxu0 %v2939_v45  ;;  %2301 = vmatprep.mubr.msk.bf16.mxu0 %vm2595_vm0, %v2594_v2  ;;  %v1604_v45 = vld [vmem:[#allocation2 + $0x60] ss:$8 sps:$4 sm:$0xff]  }
0x1066   :  { %2299 = vmatprep.subr.bf16.mxu0 %v2594_v2  ;;  %v1654_v20 = vunpack.c.l.bf16 %v1604_v45  ;;  %v1655_v52 = vunpack.c.h.bf16 %v1604_v45 }
0x1069   :  { %2300 = vmatpush3.bf16.msra.mxu0 %v2948_v48 }
0x109b   :  { %v1663_v44 = vpop.permute.xlu1 %1662 }
0x109c   :  { %2294 = vmatmul.mubr.msk.bf16.vlgmr.msra.gmra.mxu1 %vm373_vm2, %v1663_v44 }
0x109d   :  { %2306 = vmatpush3.bf16.msra.mxu1 %v2956_v50  ;;  %2309 = vmatprep.mubr.msk.bf16.mxu1 %vm2595_vm0, %v2594_v2 }
0x109e   :  { %2307 = vmatprep.subr.bf16.mxu1 %v2594_v2  ;;  %v1658_v2 = vld [vmem:[#allocation2 + $0x14] ss:$8 sps:$4 sm:$0xff]  }
0x109f   :  { %v1708_v21 = vunpack.c.l.bf16 %v1658_v2  ;;  %v1709_v27 = vunpack.c.h.bf16 %v1658_v2 }
0x10a1   :  { %2308 = vmatpush3.bf16.msra.mxu1 %v2965_v51 }
0x1124   :  { %v1647_v1 = vpop.f32.mrf.mxu0 }
0x1125   :  { %v1656_v58 = vadd.f32 %v1654_v20, %v1647_v1 }
0x1126   :  { %v2287_v23 = vpop.f32.mrf.mxu0 }
0x1127   :  { %2525 = vtanh.f32 %v1656_v58  ;;  %v2111_v34 = vmul.f32 -1.442695, %v1656_v58 }
0x1128   :  { %v1650_v48 = vpop.f32.mrf.mxu0 }
0x1129   :  { %v1657_v24 = vadd.f32 %v1655_v52, %v1650_v48 }
0x112a   :  { %v2288_v25 = vpop.f32.mrf.mxu0 }
0x112b   :  { %2527 = vtanh.f32 %v1657_v24  ;;  %v2112_v36 = vmul.f32 -1.442695, %v1657_v24 }
0x1134   :  { %v2526_v5 = vpop.eup %2525 }
0x1135   :  { %1730 = vrot.lane.b32.xlu0 %v2526_v5, %s2596_s0 }
0x1138   :  { %v2528_v50 = vpop.eup %2527 }
0x1139   :  { %1732 = vrot.lane.b32.xlu1 %v2528_v50, %s2596_s0  ;;  %v1808_v50 = vld [vmem:[#allocation2 + $0x70] ss:$8 sps:$4 sm:$0xff]  }
0x113a   :  { %v1858_v2 = vunpack.c.l.bf16 %v1808_v50 }
0x115c   :  { %v1701_v51 = vpop.f32.mrf.mxu1 }
0x115d   :  { %v1710_v26 = vadd.f32 %v1708_v21, %v1701_v51 }
0x115e   :  { %v2295_v47 = vpop.f32.mrf.mxu1 }
0x115f   :  { %2529 = vtanh.f32 %v1710_v26  ;;  %v2113_v62 = vmul.f32 -1.442695, %v1710_v26  ;;  %v1859_v47 = vunpack.c.h.bf16 %v1808_v50 }
0x1160   :  { %v1704_v30 = vpop.f32.mrf.mxu1 }
0x1161   :  { %v1711_v32 = vadd.f32 %v1709_v27, %v1704_v30 }
0x1162   :  { %v2296_v33 = vpop.f32.mrf.mxu1 }
0x1163   :  { %2531 = vtanh.f32 %v1711_v32  ;;  %v2114_v6 = vmul.f32 -1.442695, %v1711_v32 }
0x1164   :  { %2533 = vpow2.f32 %v2111_v34 }
0x1165   :  { %2535 = vpow2.f32 %v2112_v36 }
0x116c   :  { %v2530_v56 = vpop.eup %2529 }
0x116d   :  { %1778 = vrot.lane.b32.xlu0 %v2530_v56, %s2596_s0 }
0x1170   :  { %v2532_v8 = vpop.eup %2531 }
0x1171   :  { %1780 = vrot.lane.b32.xlu1 %v2532_v8, %s2596_s0  ;;  %v2534_v17 = vpop.eup %2533  ;;  %v1862_v8 = vld [vmem:[#allocation2 + $0x4] ss:$8 sps:$4 sm:$0xff]  }
0x1172   :  { %v1718_v39 = vadd.f32 1.0, %v2534_v17  ;;  %v2536_v41 = vpop.eup %2535  ;;  %v1912_v34 = vunpack.c.l.bf16 %v1862_v8 }
0x1173   :  { %v1719_v42 = vadd.f32 1.0, %v2536_v41  ;;  %v1913_v41 = vunpack.c.h.bf16 %v1862_v8 }
0x1174   :  { %2537 = vrcp.f32 %v1718_v39 }
0x1175   :  { %2539 = vrcp.f32 %v1719_v42 }
0x1176   :  { %2541 = vpow2.f32 %v2113_v62 }
0x1177   :  { %2543 = vpow2.f32 %v2114_v6 }
0x1181   :  { %v2538_v63 = vpop.eup %2537 }
0x1182   :  { %v2540_v54 = vpop.eup %2539  ;;  %v1726_v13 = vmul.f32 %v2538_v63, %v3030_v38 }
0x1183   :  { %v2542_v35 = vpop.eup %2541  ;;  %v1727_v53 = vmul.f32 %v2540_v54, %v3034_v7 }
0x1184   :  { %v1766_v0 = vadd.f32 1.0, %v2542_v35  ;;  %v2544_v3 = vpop.eup %2543 }
0x1185   :  { %v1767_v29 = vadd.f32 1.0, %v2544_v3 }
0x1186   :  { %2545 = vrcp.f32 %v1766_v0 }
0x1187   :  { %2547 = vrcp.f32 %v1767_v29 }
0x1193   :  { %v2546_v10 = vpop.eup %2545 }
0x1194   :  { %v2548_v43 = vpop.eup %2547  ;;  %v1774_v38 = vmul.f32 %v2546_v10, %v3040_v12 }
0x1195   :  { %v1775_v7 = vmul.f32 %v2548_v43, %v3044_v40 }
0x11a7   :  { %v1731_v49 = vpop.permute.xlu0 %1730 }
0x11a8   :  { %v1736_v4 = vmul.f32 %v2538_v63, %v1731_v49 }
0x11aa   :  { %1740 = vrot.lane.b32.xlu0 %v1736_v4, %s2597_s2 }
0x11ab   :  { %v1733_v59 = vpop.permute.xlu1 %1732 }
0x11ac   :  { %v1737_v61 = vmul.f32 %v2540_v54, %v1733_v59 }
0x11ae   :  { %1742 = vrot.lane.b32.xlu1 %v1737_v61, %s2597_s2 }
0x11df   :  { %v1779_v11 = vpop.permute.xlu0 %1778 }
0x11e0   :  { %v1784_v37 = vmul.f32 %v2546_v10, %v1779_v11 }
0x11e2   :  { %1788 = vrot.lane.b32.xlu0 %v1784_v37, %s2597_s2 }
0x11e3   :  { %v1781_v9 = vpop.permute.xlu1 %1780 }
0x11e4   :  { %v1785_v22 = vmul.f32 %v2548_v43, %v1781_v9 }
0x11e6   :  { %1790 = vrot.lane.b32.xlu1 %v1785_v22, %s2597_s2 }
0x121c   :  { %v1741_v14 = vpop.permute.xlu0 %1740 }
0x121d   :  { %v3072_v15 = vadd.f32 %v1741_v14, %v1726_v13 }
0x121f   :  { %2549 = vtanh.f32 %v3072_v15 }
0x1220   :  { %v1743_v55 = vpop.permute.xlu1 %1742 }
0x1221   :  { %v3076_v46 = vadd.f32 %v1743_v55, %v1727_v53 }
0x1223   :  { %2551 = vtanh.f32 %v3076_v46 }
0x122c   :  { %v2550_v28 = vpop.eup %2549 }
0x122d   :  { %1752 = vrot.lane.b32.xlu0 %v2550_v28, %s2596_s0 }
0x1230   :  { %v2552_v60 = vpop.eup %2551 }
0x1231   :  { %1754 = vrot.lane.b32.xlu1 %v2552_v60, %s2596_s0 }
0x1254   :  { %v1789_v57 = vpop.permute.xlu0 %1788 }
0x1255   :  { %v3082_v16 = vadd.f32 %v1789_v57, %v1774_v38 }
0x1257   :  { %2553 = vtanh.f32 %v3082_v16 }
0x1258   :  { %v1791_v18 = vpop.permute.xlu1 %1790 }
0x1259   :  { %v3086_v31 = vadd.f32 %v1791_v18, %v1775_v7 }
0x125b   :  { %2555 = vtanh.f32 %v3086_v31 }
0x1264   :  { %v2554_v19 = vpop.eup %2553 }
0x1265   :  { %1800 = vrot.lane.b32.xlu0 %v2554_v19, %s2596_s0 }
0x1268   :  { %v2556_v44 = vpop.eup %2555 }
0x1269   :  { %1802 = vrot.lane.b32.xlu1 %v2556_v44, %s2596_s0 }
0x129f   :  { %v1753_v45 = vpop.permute.xlu0 %1752 }
0x12a0   :  { %v1758_v20 = vmul.f32 %v2538_v63, %v1753_v45 }
0x12a3   :  { %v1755_v12 = vpop.permute.xlu1 %1754 }
0x12a4   :  { %v1759_v1 = vmul.f32 %v2540_v54, %v1755_v12 }
0x12a6   :  { %v1810_v58 = vpack.c.bf16 %v1759_v1, %v1758_v20 }
0x12a8   :  { %1812 = vrot.lane.b32.xlu0 %v1810_v58, %s2597_s2 }
0x12d7   :  { %v1801_v23 = vpop.permute.xlu0 %1800 }
0x12d8   :  { %v1806_v52 = vmul.f32 %v2546_v10, %v1801_v23 }
0x12db   :  { %v1803_v40 = vpop.permute.xlu1 %1802 }
0x12dc   :  { %v1807_v48 = vmul.f32 %v2548_v43, %v1803_v40 }
0x12de   :  { %v1864_v24 = vpack.c.bf16 %v1807_v48, %v1806_v52 }
0x12e0   :  { %1866 = vrot.lane.b32.xlu1 %v1864_v24, %s2597_s2 }
0x131a   :  { %v1813_v25 = vpop.permute.xlu0 %1812 }
0x131b   :  { %2302 = vmatmul.mubr.msk.bf16.vlgmr.msra.gmra.mxu0 %vm373_vm2, %v1813_v25 }
0x1352   :  { %v1867_v5 = vpop.permute.xlu1 %1866 }
0x1353   :  { %2310 = vmatmul.mubr.msk.bf16.vlgmr.msra.gmra.mxu1 %vm373_vm2, %v1867_v5 }
0x13db   :  { %v1851_v21 = vpop.f32.mrf.mxu0 }
0x13dc   :  { %v1860_v51 = vadd.f32 %v1858_v2, %v1851_v21 }
0x13dd   :  { %v2303_v26 = vpop.f32.mrf.mxu0 }
0x13de   :  { %2557 = vtanh.f32 %v1860_v51  ;;  %v2117_v59 = vmul.f32 -1.442695, %v1860_v51 }
0x13df   :  { %v1854_v27 = vpop.f32.mrf.mxu0 }
0x13e0   :  { %v1861_v30 = vadd.f32 %v1859_v47, %v1854_v27 }
0x13e1   :  { %v2304_v32 = vpop.f32.mrf.mxu0 }
0x13e2   :  { %2559 = vtanh.f32 %v1861_v30  ;;  %v2118_v61 = vmul.f32 -1.442695, %v1861_v30 }
0x13eb   :  { %v2558_v33 = vpop.eup %2557 }
0x13ec   :  { %1934 = vrot.lane.b32.xlu0 %v2558_v33, %s2596_s0 }
0x13ef   :  { %v2560_v56 = vpop.eup %2559 }
0x13f0   :  { %1936 = vrot.lane.b32.xlu1 %v2560_v56, %s2596_s0 }
0x1413   :  { %v1905_v36 = vpop.f32.mrf.mxu1 }
0x1414   :  { %v1914_v17 = vadd.f32 %v1912_v34, %v1905_v36 }
0x1415   :  { %v2311_v39 = vpop.f32.mrf.mxu1 }
0x1416   :  { %2561 = vtanh.f32 %v1914_v17  ;;  %v2119_v9 = vmul.f32 -1.442695, %v1914_v17 }
0x1417   :  { %v1908_v42 = vpop.f32.mrf.mxu1 }
0x1418   :  { %v1915_v63 = vadd.f32 %v1913_v41, %v1908_v42 }
0x1419   :  { %v2312_v49 = vpop.f32.mrf.mxu1 }
0x141a   :  { %2563 = vtanh.f32 %v1915_v63  ;;  %v2120_v22 = vmul.f32 -1.442695, %v1915_v63 }
0x141b   :  { %2565 = vpow2.f32 %v2117_v59 }
0x141c   :  { %2567 = vpow2.f32 %v2118_v61 }
0x1423   :  { %v2562_v4 = vpop.eup %2561 }
0x1424   :  { %1982 = vrot.lane.b32.xlu0 %v2562_v4, %s2596_s0 }
0x1427   :  { %v2564_v54 = vpop.eup %2563 }
0x1428   :  { %1984 = vrot.lane.b32.xlu1 %v2564_v54, %s2596_s0  ;;  %v2566_v62 = vpop.eup %2565 }
0x1429   :  { %v1922_v6 = vadd.f32 1.0, %v2566_v62  ;;  %v2568_v35 = vpop.eup %2567 }
0x142a   :  { %v1923_v0 = vadd.f32 1.0, %v2568_v35 }
0x142b   :  { %2569 = vrcp.f32 %v1922_v6 }
0x142c   :  { %2571 = vrcp.f32 %v1923_v0 }
0x142d   :  { %2573 = vpow2.f32 %v2119_v9 }
0x142e   :  { %2575 = vpow2.f32 %v2120_v22 }
0x1438   :  { %v2570_v3 = vpop.eup %2569 }
0x1439   :  { %v2572_v11 = vpop.eup %2571  ;;  %v1930_v19 = vmul.f32 %v2570_v3, %v3072_v15 }
0x143a   :  { %v2574_v13 = vpop.eup %2573  ;;  %v1931_v12 = vmul.f32 %v2572_v11, %v3076_v46 }
0x143b   :  { %v1970_v14 = vadd.f32 1.0, %v2574_v13  ;;  %v2576_v53 = vpop.eup %2575 }
0x143c   :  { %v1971_v55 = vadd.f32 1.0, %v2576_v53 }
0x143d   :  { %2577 = vrcp.f32 %v1970_v14 }
0x143e   :  { %2579 = vrcp.f32 %v1971_v55 }
0x144a   :  { %v2578_v28 = vpop.eup %2577 }
0x144b   :  { %v2580_v57 = vpop.eup %2579  ;;  %v1978_v40 = vmul.f32 %v2578_v28, %v3082_v16 }
0x144c   :  { %v1979_v15 = vmul.f32 %v2580_v57, %v3086_v31 }
0x145e   :  { %v1935_v29 = vpop.permute.xlu0 %1934 }
0x145f   :  { %v1940_v10 = vmul.f32 %v2570_v3, %v1935_v29 }
0x1461   :  { %1944 = vrot.lane.b32.xlu0 %v1940_v10, %s2597_s2 }
0x1462   :  { %v1937_v37 = vpop.permute.xlu1 %1936 }
0x1463   :  { %v1941_v43 = vmul.f32 %v2572_v11, %v1937_v37 }
0x1465   :  { %1946 = vrot.lane.b32.xlu1 %v1941_v43, %s2597_s2 }
0x1496   :  { %v1983_v60 = vpop.permute.xlu0 %1982 }
0x1497   :  { %v1988_v38 = vmul.f32 %v2578_v28, %v1983_v60 }
0x1499   :  { %1992 = vrot.lane.b32.xlu0 %v1988_v38, %s2597_s2 }
0x149a   :  { %v1985_v7 = vpop.permute.xlu1 %1984 }
0x149b   :  { %v1989_v18 = vmul.f32 %v2580_v57, %v1985_v7 }
0x149d   :  { %1994 = vrot.lane.b32.xlu1 %v1989_v18, %s2597_s2 }
0x14d3   :  { %v1945_v44 = vpop.permute.xlu0 %1944 }
0x14d4   :  { %v1950_v45 = vadd.f32 %v1945_v44, %v1930_v19 }
0x14d6   :  { %2581 = vtanh.f32 %v1950_v45 }
0x14d7   :  { %v1947_v20 = vpop.permute.xlu1 %1946 }
0x14d8   :  { %v1951_v1 = vadd.f32 %v1947_v20, %v1931_v12 }
0x14da   :  { %2583 = vtanh.f32 %v1951_v1 }
0x14e3   :  { %v2582_v58 = vpop.eup %2581 }
0x14e4   :  { %1956 = vrot.lane.b32.xlu0 %v2582_v58, %s2596_s0 }
0x14e7   :  { %v2584_v23 = vpop.eup %2583 }
0x14e8   :  { %1958 = vrot.lane.b32.xlu1 %v2584_v23, %s2596_s0 }
0x150b   :  { %v1993_v52 = vpop.permute.xlu0 %1992 }
0x150c   :  { %v1998_v48 = vadd.f32 %v1993_v52, %v1978_v40 }
0x150e   :  { %2585 = vtanh.f32 %v1998_v48 }
0x150f   :  { %v1995_v24 = vpop.permute.xlu1 %1994 }
0x1510   :  { %v1999_v25 = vadd.f32 %v1995_v24, %v1979_v15 }
0x1512   :  { %2587 = vtanh.f32 %v1999_v25 }
0x151b   :  { %v2586_v46 = vpop.eup %2585 }
0x151c   :  { %2004 = vrot.lane.b32.xlu0 %v2586_v46, %s2596_s0 }
0x151f   :  { %v2588_v5 = vpop.eup %2587 }
0x1520   :  { %2006 = vrot.lane.b32.xlu1 %v2588_v5, %s2596_s0 }
0x1556   :  { %v1957_v50 = vpop.permute.xlu0 %1956 }
0x1557   :  { %v1962_v2 = vmul.f32 %v2570_v3, %v1957_v50 }
0x1559   :  { %2014 = vrot.lane.b32.xlu0 %v1962_v2, %s2597_s2 }
0x155a   :  { %v1959_v21 = vpop.permute.xlu1 %1958 }
0x155b   :  { %v1963_v16 = vmul.f32 %v2572_v11, %v1959_v21 }
0x155d   :  { %2016 = vrot.lane.b32.xlu1 %v1963_v16, %s2597_s2 }
0x158e   :  { %v2005_v51 = vpop.permute.xlu0 %2004 }
0x158f   :  { %v2010_v26 = vmul.f32 %v2578_v28, %v2005_v51 }
0x1591   :  { %2024 = vrot.lane.b32.xlu0 %v2010_v26, %s2596_s0 }
0x1592   :  { %v2007_v31 = vpop.permute.xlu1 %2006 }
0x1593   :  { %v2011_v47 = vmul.f32 %v2580_v57, %v2007_v31 }
0x1595   :  { %2026 = vrot.lane.b32.xlu1 %v2011_v47, %s2596_s0 }
0x15cb   :  { %v2015_v27 = vpop.permute.xlu0 %2014 }
0x15cc   :  { %2020 = vst.msk [vmem:[%s3134_s5] sm:$0xff] %vm373_vm2, %v2015_v27 }
0x15cf   :  { %v2017_v30 = vpop.permute.xlu1 %2016 }
0x15d0   :  { %2021 = vst.msk [vmem:[%s3134_s5 + $0x8] sm:$0xff] %vm373_vm2, %v2017_v30 }
0x1603   :  { %v2025_v32 = vpop.permute.xlu0 %2024 }
0x1604   :  { %2031 = vst.msk [vmem:[%s3134_s5] sm:$0xff] %vm2030_vm3, %v2025_v32 }
0x1607   :  { %v2027_v33 = vpop.permute.xlu1 %2026 }
0x1608   :  { %2032 = vst.msk [vmem:[%s3134_s5 + $0x8] sm:$0xff] %vm2030_vm3, %v2027_v33 }

</bundles_post_ra>
